<compile_context>
chip_gen: v5e
topology: v5e:2x2
jax: 0.10.0
libtpu: 0.0.40
codegen_flags: <defaults>
</compile_context>

<pallas_src>
import math
import numpy as np
import jax
import jax.numpy as jnp
from jax.experimental import pallas as pl
from jax.experimental.pallas import tpu as pltpu

# ----------------------------- config ---------------------------------------
IN_CH = 4            # in_channels
MODEL_CH = 64        # model_channels
OUT_CH = 8           # out_channels
Z_CH = 16            # z_channels
NUM_RES_BLOCKS = 2
FREQ_EMB = 256       # frequency_embedding_size
N = 16               # batch
EPS = 1e-6

_N_HEAD = 15         # x, t, c, freqs, in_w, in_b, wt1c, wt1s, bt1, wt2, bt2, wc, bc, ada_w, ada_b


# ----------------------------- shared math helpers ---------------------------
def _silu(x):
    return x * jax.nn.sigmoid(x)


def _mm(a, b):
    """bf16 operands, f32 MXU accumulation (used by kernel AND reference)."""
    return jnp.dot(a.astype(jnp.bfloat16), b.astype(jnp.bfloat16),
                   preferred_element_type=jnp.float32)


def _layernorm(x, eps=EPS):
    m = jnp.mean(x, axis=-1, keepdims=True)
    v = jnp.mean(jnp.square(x - m), axis=-1, keepdims=True)
    return (x - m) * jax.lax.rsqrt(v + eps)


# ----------------------------- fused kernel ----------------------------------
def fused_forward_kernel(*refs):
    (x_ref, t_ref, c_ref, freqs_ref,
     in_w_ref, in_b_ref,
     wt1c_ref, wt1s_ref, bt1_ref, wt2_ref, bt2_ref, wc_ref, bc_ref,
     ada_w_ref, ada_b_ref) = refs[:_N_HEAD]
    blk_refs = refs[_N_HEAD:_N_HEAD + 6 * NUM_RES_BLOCKS]
    wlin_ref, blin_ref, o_ref = refs[_N_HEAD + 6 * NUM_RES_BLOCKS:]

    C = MODEL_CH

    # ---- input_proj ----
    h = _mm(x_ref[...], in_w_ref[...]) + in_b_ref[...]                  # (N, C) f32

    # ---- timestep embedding (freq table precomputed on host) ----
    args = t_ref[...] * freqs_ref[...]                                  # (N, half)
    te = (_mm(jnp.cos(args), wt1c_ref[...])
          + _mm(jnp.sin(args), wt1s_ref[...]) + bt1_ref[...])
    te = _mm(_silu(te), wt2_ref[...]) + bt2_ref[...]

    # ---- cond embedding, y = t_emb + c_emb ----
    ce = _mm(c_ref[...], wc_ref[...]) + bc_ref[...]
    y = te + ce

    # ---- all adaLN projections in one 512-column matmul (SiLU(y) computed once) ----
    ada = _mm(_silu(y), ada_w_ref[...]) + ada_b_ref[...]                # (N, 8C)

    # ---- residual blocks ----
    for b in range(NUM_RES_BLOCKS):
        lnw, lnb, w1, b1, w2, b2 = blk_refs[6 * b:6 * (b + 1)]
        base = 3 * C * b
        shift = ada[:, base:base + C]
        scale = ada[:, base + C:base + 2 * C]
        gate = ada[:, base + 2 * C:base + 3 * C]

        xn = _layernorm(h) * lnw[...] + lnb[...]
        hm = xn * (1.0 + scale) + shift
        hm = _silu(_mm(hm, w1[...]) + b1[...])
        hm = _mm(hm, w2[...]) + b2[...]
        h = h + gate * hm

    # ---- final layer (LayerNorm without affine) ----
    base = 3 * C * NUM_RES_BLOCKS
    shift = ada[:, base:base + C]
    scale = ada[:, base + C:base + 2 * C]
    hm = _layernorm(h) * (1.0 + scale) + shift
    o_ref[...] = (_mm(hm, wlin_ref[...]) + blin_ref[...]).astype(o_ref.dtype)
    # TODO(synk): grad_checkpointing / forward_with_cfg are training- or sampler-side
    # wrappers around this forward; the forward math implemented here is identical.


# ----------------------------- wrapper ---------------------------------------
def prep_kernel_params(p):
    """Flatten + convert params to the fused-kernel layout (weights in bf16)."""
    half = FREQ_EMB // 2
    bf = lambda w: w.astype(jnp.bfloat16)
    freqs = jnp.exp(-math.log(10000.0)
                    * jnp.arange(half, dtype=jnp.float32) / half).reshape(1, half)

    ada_w = jnp.concatenate([blk["wada"] for blk in p["blocks"]]
                            + [p["final"]["wada"]], axis=1)             # (C, 8C)
    ada_b = jnp.concatenate([blk["bada"] for blk in p["blocks"]]
                            + [p["final"]["bada"]], axis=1)             # (1, 8C)

    args = [freqs,
            bf(p["in_w"]), p["in_b"],
            bf(p["wt1"][:half]), bf(p["wt1"][half:]), p["bt1"],
            bf(p["wt2"]), p["bt2"],
            bf(p["wc"]), p["bc"],
            bf(ada_w), ada_b]
    for blk in p["blocks"]:
        args += [blk["ln_w"], blk["ln_b"],
                 bf(blk["w1"]), blk["b1"], bf(blk["w2"]), blk["b2"]]
    args += [bf(p["final"]["wlin"]), p["final"]["blin"]]
    return args


def forward(kernel_args, x, t, c):
    """SimpleMLPAdaLN.forward: x[N,in_ch], t[N], c[N,z_ch] -> [N,out_ch]."""
    n = x.shape[0]
    t2 = t.reshape(n, 1).astype(jnp.float32)
    # Single invocation: no grid, whole arrays resident in VMEM (total footprint << VMEM).
    return pl.pallas_call(
        fused_forward_kernel,
        out_shape=jax.ShapeDtypeStruct((n, OUT_CH), jnp.float32),
    )(x, t2, c, *kernel_args)


# ----------------------------- params ---------------------------------------
def init_params(key):
    keys = iter(jax.random.split(key, 64))

    def xavier(shape):
        fan_in, fan_out = shape
        b = math.sqrt(6.0 / (fan_in + fan_out))
        return jax.random.uniform(next(keys), shape, jnp.float32, -b, b)

    def normal(shape, std=0.02):
        return std * jax.random.normal(next(keys), shape, jnp.float32)

    def zeros(shape):
        return jnp.zeros(shape, jnp.float32)

    p = {
        "in_w": xavier((IN_CH, MODEL_CH)), "in_b": zeros((1, MODEL_CH)),
        "wt1": normal((FREQ_EMB, MODEL_CH)), "bt1": zeros((1, MODEL_CH)),
        "wt2": normal((MODEL_CH, MODEL_CH)), "bt2": zeros((1, MODEL_CH)),
        "wc": xavier((Z_CH, MODEL_CH)), "bc": zeros((1, MODEL_CH)),
        "blocks": [],
    }
    for _ in range(NUM_RES_BLOCKS):
        p["blocks"].append({
            "ln_w": jnp.ones((1, MODEL_CH), jnp.float32),
            "ln_b": zeros((1, MODEL_CH)),
            "w1": xavier((MODEL_CH, MODEL_CH)), "b1": zeros((1, MODEL_CH)),
            "w2": xavier((MODEL_CH, MODEL_CH)), "b2": zeros((1, MODEL_CH)),
            # The PyTorch module zero-inits adaLN weights (output would trivially equal x);
            # use small deterministic random values so the gated path is exercised.
            "wada": normal((MODEL_CH, 3 * MODEL_CH)),
            "bada": zeros((1, 3 * MODEL_CH)),
        })
    p["final"] = {
        "wada": normal((MODEL_CH, 2 * MODEL_CH)),
        "bada": zeros((1, 2 * MODEL_CH)),
        # Module zero-inits the final linear; use xavier so the output is non-trivial.
        "wlin": xavier((MODEL_CH, OUT_CH)),
        "blin": zeros((1, OUT_CH)),
    }
    return p


# ----------------------------- pure-JAX reference ----------------------------
def reference_forward(p, x, t, c):
    h = _mm(x, p["in_w"]) + p["in_b"]
    half = FREQ_EMB // 2
    freqs = jnp.exp(-math.log(10000.0) * jnp.arange(half, dtype=jnp.float32) / half)
    args = t[:, None].astype(jnp.float32) * freqs[None]
    tf = jnp.concatenate([jnp.cos(args), jnp.sin(args)], axis=-1)
    te = _mm(_silu(_mm(tf, p["wt1"]) + p["bt1"]), p["wt2"]) + p["bt2"]
    ce = _mm(c, p["wc"]) + p["bc"]
    y = te + ce
    for blk in p["blocks"]:
        ada = _mm(_silu(y), blk["wada"]) + blk["bada"]
        shift, scale, gate = jnp.split(ada, 3, axis=-1)
        hn = _layernorm(h) * blk["ln_w"] + blk["ln_b"]
        hm = _silu(_mm(hn * (1.0 + scale) + shift, blk["w1"]) + blk["b1"])
        hm = _mm(hm, blk["w2"]) + blk["b2"]
        h = h + gate * hm
    f = p["final"]
    ada = _mm(_silu(y), f["wada"]) + f["bada"]
    shift, scale = jnp.split(ada, 2, axis=-1)
    hm = _layernorm(h) * (1.0 + scale) + shift
    return _mm(hm, f["wlin"]) + f["blin"]


# ----------------------------- main ------------------------------------------
if __name__ == "__main__":
    key = jax.random.PRNGKey(0)
    kx, kt, kc, kp = jax.random.split(key, 4)
    x = jax.random.normal(kx, (N, IN_CH), jnp.float32)
    t = jax.random.uniform(kt, (N,), jnp.float32, 0.0, 1000.0)
    c = jax.random.normal(kc, (N, Z_CH), jnp.float32)
    params = init_params(kp)
    kargs = prep_kernel_params(params)

    out = forward(kargs, x, t, c)
    out = jax.block_until_ready(out)
    assert out.shape == (N, OUT_CH), out.shape

    ref = reference_forward(params, x, t, c)
    # bf16 operands / f32 accumulation in both paths; tolerance sized for bf16 numerics.
    np.testing.assert_allclose(np.asarray(out), np.asarray(ref), rtol=1e-2, atol=1e-2)

    print("KERNEL_OK")
</pallas_src>

<mosaic_0001>
module attributes {stable_mosaic.version = 11 : i64} {
  func.func @fused_forward_kernel(%arg0: memref<16x4xf32, #tpu.memory_space<vmem>>, %arg1: memref<16x1xf32, #tpu.memory_space<vmem>>, %arg2: memref<16x16xf32, #tpu.memory_space<vmem>>, %arg3: memref<1x128xf32, #tpu.memory_space<vmem>>, %arg4: memref<4x64xbf16, #tpu.memory_space<vmem>>, %arg5: memref<1x64xf32, #tpu.memory_space<vmem>>, %arg6: memref<128x64xbf16, #tpu.memory_space<vmem>>, %arg7: memref<128x64xbf16, #tpu.memory_space<vmem>>, %arg8: memref<1x64xf32, #tpu.memory_space<vmem>>, %arg9: memref<64x64xbf16, #tpu.memory_space<vmem>>, %arg10: memref<1x64xf32, #tpu.memory_space<vmem>>, %arg11: memref<16x64xbf16, #tpu.memory_space<vmem>>, %arg12: memref<1x64xf32, #tpu.memory_space<vmem>>, %arg13: memref<64x512xbf16, #tpu.memory_space<vmem>>, %arg14: memref<1x512xf32, #tpu.memory_space<vmem>>, %arg15: memref<1x64xf32, #tpu.memory_space<vmem>>, %arg16: memref<1x64xf32, #tpu.memory_space<vmem>>, %arg17: memref<64x64xbf16, #tpu.memory_space<vmem>>, %arg18: memref<1x64xf32, #tpu.memory_space<vmem>>, %arg19: memref<64x64xbf16, #tpu.memory_space<vmem>>, %arg20: memref<1x64xf32, #tpu.memory_space<vmem>>, %arg21: memref<1x64xf32, #tpu.memory_space<vmem>>, %arg22: memref<1x64xf32, #tpu.memory_space<vmem>>, %arg23: memref<64x64xbf16, #tpu.memory_space<vmem>>, %arg24: memref<1x64xf32, #tpu.memory_space<vmem>>, %arg25: memref<64x64xbf16, #tpu.memory_space<vmem>>, %arg26: memref<1x64xf32, #tpu.memory_space<vmem>>, %arg27: memref<64x8xbf16, #tpu.memory_space<vmem>>, %arg28: memref<1x8xf32, #tpu.memory_space<vmem>>, %arg29: memref<16x8xf32, #tpu.memory_space<vmem>>) attributes {dimension_semantics = [], scalar_prefetch = 0 : i64, scratch_operands = 0 : i64, tpu.core_type = #tpu.core_type<tc>} {
    %c0 = arith.constant 0 : index
    %c0_0 = arith.constant 0 : index
    %0 = vector.load %arg0[%c0, %c0_0] : memref<16x4xf32, #tpu.memory_space<vmem>>, vector<16x4xf32>
    %c0_1 = arith.constant 0 : index
    %c0_2 = arith.constant 0 : index
    %1 = vector.load %arg4[%c0_1, %c0_2] : memref<4x64xbf16, #tpu.memory_space<vmem>>, vector<4x64xbf16>
    %2 = arith.truncf %0 : vector<16x4xf32> to vector<16x4xbf16>
    %cst = arith.constant dense<0.000000e+00> : vector<16x64xf32>
    %3 = tpu.matmul %2, %1, %cst {dimension_numbers = #tpu.dot_dimension_numbers<[1], [0], [0], [1], [0, 0, 1, 1], [], []>} : vector<16x4xbf16>, vector<4x64xbf16>, vector<16x64xf32> -> vector<16x64xf32>
    %c0_3 = arith.constant 0 : index
    %c0_4 = arith.constant 0 : index
    %4 = vector.load %arg5[%c0_3, %c0_4] : memref<1x64xf32, #tpu.memory_space<vmem>>, vector<1x64xf32>
    %5 = vector.broadcast %4 : vector<1x64xf32> to vector<16x64xf32>
    %6 = arith.addf %3, %5 : vector<16x64xf32>
    %c0_5 = arith.constant 0 : index
    %c0_6 = arith.constant 0 : index
    %7 = vector.load %arg1[%c0_5, %c0_6] : memref<16x1xf32, #tpu.memory_space<vmem>>, vector<16x1xf32>
    %c0_7 = arith.constant 0 : index
    %c0_8 = arith.constant 0 : index
    %8 = vector.load %arg3[%c0_7, %c0_8] : memref<1x128xf32, #tpu.memory_space<vmem>>, vector<1x128xf32>
    %9 = vector.broadcast %7 : vector<16x1xf32> to vector<16x128xf32>
    %10 = vector.broadcast %8 : vector<1x128xf32> to vector<16x128xf32>
    %11 = arith.mulf %9, %10 : vector<16x128xf32>
    %12 = math.cos %11 : vector<16x128xf32>
    %c0_9 = arith.constant 0 : index
    %c0_10 = arith.constant 0 : index
    %13 = vector.load %arg6[%c0_9, %c0_10] : memref<128x64xbf16, #tpu.memory_space<vmem>>, vector<128x64xbf16>
    %14 = arith.truncf %12 : vector<16x128xf32> to vector<16x128xbf16>
    %cst_11 = arith.constant dense<0.000000e+00> : vector<16x64xf32>
    %15 = tpu.matmul %14, %13, %cst_11 {dimension_numbers = #tpu.dot_dimension_numbers<[1], [0], [0], [1], [0, 0, 1, 1], [], []>} : vector<16x128xbf16>, vector<128x64xbf16>, vector<16x64xf32> -> vector<16x64xf32>
    %16 = math.sin %11 : vector<16x128xf32>
    %c0_12 = arith.constant 0 : index
    %c0_13 = arith.constant 0 : index
    %17 = vector.load %arg7[%c0_12, %c0_13] : memref<128x64xbf16, #tpu.memory_space<vmem>>, vector<128x64xbf16>
    %18 = arith.truncf %16 : vector<16x128xf32> to vector<16x128xbf16>
    %cst_14 = arith.constant dense<0.000000e+00> : vector<16x64xf32>
    %19 = tpu.matmul %18, %17, %cst_14 {dimension_numbers = #tpu.dot_dimension_numbers<[1], [0], [0], [1], [0, 0, 1, 1], [], []>} : vector<16x128xbf16>, vector<128x64xbf16>, vector<16x64xf32> -> vector<16x64xf32>
    %20 = arith.addf %15, %19 : vector<16x64xf32>
    %c0_15 = arith.constant 0 : index
    %c0_16 = arith.constant 0 : index
    %21 = vector.load %arg8[%c0_15, %c0_16] : memref<1x64xf32, #tpu.memory_space<vmem>>, vector<1x64xf32>
    %22 = vector.broadcast %21 : vector<1x64xf32> to vector<16x64xf32>
    %23 = arith.addf %20, %22 : vector<16x64xf32>
    %24 = arith.negf %23 : vector<16x64xf32>
    %25 = math.exp %24 : vector<16x64xf32>
    %cst_17 = arith.constant 1.000000e+00 : f32
    %26 = vector.broadcast %cst_17 : f32 to vector<16x64xf32>
    %27 = arith.addf %26, %25 : vector<16x64xf32>
    %28 = arith.divf %26, %27 : vector<16x64xf32>
    %29 = arith.mulf %23, %28 : vector<16x64xf32>
    %c0_18 = arith.constant 0 : index
    %c0_19 = arith.constant 0 : index
    %30 = vector.load %arg9[%c0_18, %c0_19] : memref<64x64xbf16, #tpu.memory_space<vmem>>, vector<64x64xbf16>
    %31 = arith.truncf %29 : vector<16x64xf32> to vector<16x64xbf16>
    %cst_20 = arith.constant dense<0.000000e+00> : vector<16x64xf32>
    %32 = tpu.matmul %31, %30, %cst_20 {dimension_numbers = #tpu.dot_dimension_numbers<[1], [0], [0], [1], [0, 0, 1, 1], [], []>} : vector<16x64xbf16>, vector<64x64xbf16>, vector<16x64xf32> -> vector<16x64xf32>
    %c0_21 = arith.constant 0 : index
    %c0_22 = arith.constant 0 : index
    %33 = vector.load %arg10[%c0_21, %c0_22] : memref<1x64xf32, #tpu.memory_space<vmem>>, vector<1x64xf32>
    %34 = vector.broadcast %33 : vector<1x64xf32> to vector<16x64xf32>
    %35 = arith.addf %32, %34 : vector<16x64xf32>
    %c0_23 = arith.constant 0 : index
    %c0_24 = arith.constant 0 : index
    %36 = vector.load %arg2[%c0_23, %c0_24] : memref<16x16xf32, #tpu.memory_space<vmem>>, vector<16x16xf32>
    %c0_25 = arith.constant 0 : index
    %c0_26 = arith.constant 0 : index
    %37 = vector.load %arg11[%c0_25, %c0_26] : memref<16x64xbf16, #tpu.memory_space<vmem>>, vector<16x64xbf16>
    %38 = arith.truncf %36 : vector<16x16xf32> to vector<16x16xbf16>
    %cst_27 = arith.constant dense<0.000000e+00> : vector<16x64xf32>
    %39 = tpu.matmul %38, %37, %cst_27 {dimension_numbers = #tpu.dot_dimension_numbers<[1], [0], [0], [1], [0, 0, 1, 1], [], []>} : vector<16x16xbf16>, vector<16x64xbf16>, vector<16x64xf32> -> vector<16x64xf32>
    %c0_28 = arith.constant 0 : index
    %c0_29 = arith.constant 0 : index
    %40 = vector.load %arg12[%c0_28, %c0_29] : memref<1x64xf32, #tpu.memory_space<vmem>>, vector<1x64xf32>
    %41 = vector.broadcast %40 : vector<1x64xf32> to vector<16x64xf32>
    %42 = arith.addf %39, %41 : vector<16x64xf32>
    %43 = arith.addf %35, %42 : vector<16x64xf32>
    %44 = arith.negf %43 : vector<16x64xf32>
    %45 = math.exp %44 : vector<16x64xf32>
    %cst_30 = arith.constant 1.000000e+00 : f32
    %46 = vector.broadcast %cst_30 : f32 to vector<16x64xf32>
    %47 = arith.addf %46, %45 : vector<16x64xf32>
    %48 = arith.divf %46, %47 : vector<16x64xf32>
    %49 = arith.mulf %43, %48 : vector<16x64xf32>
    %c0_31 = arith.constant 0 : index
    %c0_32 = arith.constant 0 : index
    %50 = vector.load %arg13[%c0_31, %c0_32] : memref<64x512xbf16, #tpu.memory_space<vmem>>, vector<64x512xbf16>
    %51 = arith.truncf %49 : vector<16x64xf32> to vector<16x64xbf16>
    %cst_33 = arith.constant dense<0.000000e+00> : vector<16x512xf32>
    %52 = tpu.matmul %51, %50, %cst_33 {dimension_numbers = #tpu.dot_dimension_numbers<[1], [0], [0], [1], [0, 0, 1, 1], [], []>} : vector<16x64xbf16>, vector<64x512xbf16>, vector<16x512xf32> -> vector<16x512xf32>
    %c0_34 = arith.constant 0 : index
    %c0_35 = arith.constant 0 : index
    %53 = vector.load %arg14[%c0_34, %c0_35] : memref<1x512xf32, #tpu.memory_space<vmem>>, vector<1x512xf32>
    %54 = vector.broadcast %53 : vector<1x512xf32> to vector<16x512xf32>
    %55 = arith.addf %52, %54 : vector<16x512xf32>
    %56 = vector.extract_strided_slice %55 {offsets = [0, 0], sizes = [16, 64], strides = [1, 1]} : vector<16x512xf32> to vector<16x64xf32>
    %57 = vector.extract_strided_slice %55 {offsets = [0, 64], sizes = [16, 64], strides = [1, 1]} : vector<16x512xf32> to vector<16x64xf32>
    %58 = vector.extract_strided_slice %55 {offsets = [0, 128], sizes = [16, 64], strides = [1, 1]} : vector<16x512xf32> to vector<16x64xf32>
    %cst_36 = arith.constant dense<0.000000e+00> : vector<16xf32>
    %59 = vector.multi_reduction <add>, %6, %cst_36 [1] : vector<16x64xf32> to vector<16xf32>
    %60 = vector.shape_cast %59 : vector<16xf32> to vector<16x1xf32>
    %cst_37 = arith.constant 6.400000e+01 : f32
    %61 = vector.broadcast %cst_37 : f32 to vector<16x1xf32>
    %62 = arith.divf %60, %61 : vector<16x1xf32>
    %63 = vector.broadcast %62 : vector<16x1xf32> to vector<16x64xf32>
    %64 = arith.subf %6, %63 : vector<16x64xf32>
    %65 = arith.mulf %64, %64 : vector<16x64xf32>
    %cst_38 = arith.constant dense<0.000000e+00> : vector<16xf32>
    %66 = vector.multi_reduction <add>, %65, %cst_38 [1] : vector<16x64xf32> to vector<16xf32>
    %67 = vector.shape_cast %66 : vector<16xf32> to vector<16x1xf32>
    %cst_39 = arith.constant 6.400000e+01 : f32
    %68 = vector.broadcast %cst_39 : f32 to vector<16x1xf32>
    %69 = arith.divf %67, %68 : vector<16x1xf32>
    %70 = vector.broadcast %62 : vector<16x1xf32> to vector<16x64xf32>
    %71 = arith.subf %6, %70 : vector<16x64xf32>
    %cst_40 = arith.constant 9.99999997E-7 : f32
    %72 = vector.broadcast %cst_40 : f32 to vector<16x1xf32>
    %73 = arith.addf %69, %72 : vector<16x1xf32>
    %74 = math.rsqrt %73 : vector<16x1xf32>
    %75 = vector.broadcast %74 : vector<16x1xf32> to vector<16x64xf32>
    %76 = arith.mulf %71, %75 : vector<16x64xf32>
    %c0_41 = arith.constant 0 : index
    %c0_42 = arith.constant 0 : index
    %77 = vector.load %arg15[%c0_41, %c0_42] : memref<1x64xf32, #tpu.memory_space<vmem>>, vector<1x64xf32>
    %78 = vector.broadcast %77 : vector<1x64xf32> to vector<16x64xf32>
    %79 = arith.mulf %76, %78 : vector<16x64xf32>
    %c0_43 = arith.constant 0 : index
    %c0_44 = arith.constant 0 : index
    %80 = vector.load %arg16[%c0_43, %c0_44] : memref<1x64xf32, #tpu.memory_space<vmem>>, vector<1x64xf32>
    %81 = vector.broadcast %80 : vector<1x64xf32> to vector<16x64xf32>
    %82 = arith.addf %79, %81 : vector<16x64xf32>
    %cst_45 = arith.constant 1.000000e+00 : f32
    %83 = vector.broadcast %cst_45 : f32 to vector<16x64xf32>
    %84 = arith.addf %83, %57 : vector<16x64xf32>
    %85 = arith.mulf %82, %84 : vector<16x64xf32>
    %86 = arith.addf %85, %56 : vector<16x64xf32>
    %c0_46 = arith.constant 0 : index
    %c0_47 = arith.constant 0 : index
    %87 = vector.load %arg17[%c0_46, %c0_47] : memref<64x64xbf16, #tpu.memory_space<vmem>>, vector<64x64xbf16>
    %88 = arith.truncf %86 : vector<16x64xf32> to vector<16x64xbf16>
    %cst_48 = arith.constant dense<0.000000e+00> : vector<16x64xf32>
    %89 = tpu.matmul %88, %87, %cst_48 {dimension_numbers = #tpu.dot_dimension_numbers<[1], [0], [0], [1], [0, 0, 1, 1], [], []>} : vector<16x64xbf16>, vector<64x64xbf16>, vector<16x64xf32> -> vector<16x64xf32>
    %c0_49 = arith.constant 0 : index
    %c0_50 = arith.constant 0 : index
    %90 = vector.load %arg18[%c0_49, %c0_50] : memref<1x64xf32, #tpu.memory_space<vmem>>, vector<1x64xf32>
    %91 = vector.broadcast %90 : vector<1x64xf32> to vector<16x64xf32>
    %92 = arith.addf %89, %91 : vector<16x64xf32>
    %93 = arith.negf %92 : vector<16x64xf32>
    %94 = math.exp %93 : vector<16x64xf32>
    %cst_51 = arith.constant 1.000000e+00 : f32
    %95 = vector.broadcast %cst_51 : f32 to vector<16x64xf32>
    %96 = arith.addf %95, %94 : vector<16x64xf32>
    %97 = arith.divf %95, %96 : vector<16x64xf32>
    %98 = arith.mulf %92, %97 : vector<16x64xf32>
    %c0_52 = arith.constant 0 : index
    %c0_53 = arith.constant 0 : index
    %99 = vector.load %arg19[%c0_52, %c0_53] : memref<64x64xbf16, #tpu.memory_space<vmem>>, vector<64x64xbf16>
    %100 = arith.truncf %98 : vector<16x64xf32> to vector<16x64xbf16>
    %cst_54 = arith.constant dense<0.000000e+00> : vector<16x64xf32>
    %101 = tpu.matmul %100, %99, %cst_54 {dimension_numbers = #tpu.dot_dimension_numbers<[1], [0], [0], [1], [0, 0, 1, 1], [], []>} : vector<16x64xbf16>, vector<64x64xbf16>, vector<16x64xf32> -> vector<16x64xf32>
    %c0_55 = arith.constant 0 : index
    %c0_56 = arith.constant 0 : index
    %102 = vector.load %arg20[%c0_55, %c0_56] : memref<1x64xf32, #tpu.memory_space<vmem>>, vector<1x64xf32>
    %103 = vector.broadcast %102 : vector<1x64xf32> to vector<16x64xf32>
    %104 = arith.addf %101, %103 : vector<16x64xf32>
    %105 = arith.mulf %58, %104 : vector<16x64xf32>
    %106 = arith.addf %6, %105 : vector<16x64xf32>
    %107 = vector.extract_strided_slice %55 {offsets = [0, 192], sizes = [16, 64], strides = [1, 1]} : vector<16x512xf32> to vector<16x64xf32>
    %108 = vector.extract_strided_slice %55 {offsets = [0, 256], sizes = [16, 64], strides = [1, 1]} : vector<16x512xf32> to vector<16x64xf32>
    %109 = vector.extract_strided_slice %55 {offsets = [0, 320], sizes = [16, 64], strides = [1, 1]} : vector<16x512xf32> to vector<16x64xf32>
    %cst_57 = arith.constant dense<0.000000e+00> : vector<16xf32>
    %110 = vector.multi_reduction <add>, %106, %cst_57 [1] : vector<16x64xf32> to vector<16xf32>
    %111 = vector.shape_cast %110 : vector<16xf32> to vector<16x1xf32>
    %cst_58 = arith.constant 6.400000e+01 : f32
    %112 = vector.broadcast %cst_58 : f32 to vector<16x1xf32>
    %113 = arith.divf %111, %112 : vector<16x1xf32>
    %114 = vector.broadcast %113 : vector<16x1xf32> to vector<16x64xf32>
    %115 = arith.subf %106, %114 : vector<16x64xf32>
    %116 = arith.mulf %115, %115 : vector<16x64xf32>
    %cst_59 = arith.constant dense<0.000000e+00> : vector<16xf32>
    %117 = vector.multi_reduction <add>, %116, %cst_59 [1] : vector<16x64xf32> to vector<16xf32>
    %118 = vector.shape_cast %117 : vector<16xf32> to vector<16x1xf32>
    %cst_60 = arith.constant 6.400000e+01 : f32
    %119 = vector.broadcast %cst_60 : f32 to vector<16x1xf32>
    %120 = arith.divf %118, %119 : vector<16x1xf32>
    %121 = vector.broadcast %113 : vector<16x1xf32> to vector<16x64xf32>
    %122 = arith.subf %106, %121 : vector<16x64xf32>
    %cst_61 = arith.constant 9.99999997E-7 : f32
    %123 = vector.broadcast %cst_61 : f32 to vector<16x1xf32>
    %124 = arith.addf %120, %123 : vector<16x1xf32>
    %125 = math.rsqrt %124 : vector<16x1xf32>
    %126 = vector.broadcast %125 : vector<16x1xf32> to vector<16x64xf32>
    %127 = arith.mulf %122, %126 : vector<16x64xf32>
    %c0_62 = arith.constant 0 : index
    %c0_63 = arith.constant 0 : index
    %128 = vector.load %arg21[%c0_62, %c0_63] : memref<1x64xf32, #tpu.memory_space<vmem>>, vector<1x64xf32>
    %129 = vector.broadcast %128 : vector<1x64xf32> to vector<16x64xf32>
    %130 = arith.mulf %127, %129 : vector<16x64xf32>
    %c0_64 = arith.constant 0 : index
    %c0_65 = arith.constant 0 : index
    %131 = vector.load %arg22[%c0_64, %c0_65] : memref<1x64xf32, #tpu.memory_space<vmem>>, vector<1x64xf32>
    %132 = vector.broadcast %131 : vector<1x64xf32> to vector<16x64xf32>
    %133 = arith.addf %130, %132 : vector<16x64xf32>
    %cst_66 = arith.constant 1.000000e+00 : f32
    %134 = vector.broadcast %cst_66 : f32 to vector<16x64xf32>
    %135 = arith.addf %134, %108 : vector<16x64xf32>
    %136 = arith.mulf %133, %135 : vector<16x64xf32>
    %137 = arith.addf %136, %107 : vector<16x64xf32>
    %c0_67 = arith.constant 0 : index
    %c0_68 = arith.constant 0 : index
    %138 = vector.load %arg23[%c0_67, %c0_68] : memref<64x64xbf16, #tpu.memory_space<vmem>>, vector<64x64xbf16>
    %139 = arith.truncf %137 : vector<16x64xf32> to vector<16x64xbf16>
    %cst_69 = arith.constant dense<0.000000e+00> : vector<16x64xf32>
    %140 = tpu.matmul %139, %138, %cst_69 {dimension_numbers = #tpu.dot_dimension_numbers<[1], [0], [0], [1], [0, 0, 1, 1], [], []>} : vector<16x64xbf16>, vector<64x64xbf16>, vector<16x64xf32> -> vector<16x64xf32>
    %c0_70 = arith.constant 0 : index
    %c0_71 = arith.constant 0 : index
    %141 = vector.load %arg24[%c0_70, %c0_71] : memref<1x64xf32, #tpu.memory_space<vmem>>, vector<1x64xf32>
    %142 = vector.broadcast %141 : vector<1x64xf32> to vector<16x64xf32>
    %143 = arith.addf %140, %142 : vector<16x64xf32>
    %144 = arith.negf %143 : vector<16x64xf32>
    %145 = math.exp %144 : vector<16x64xf32>
    %cst_72 = arith.constant 1.000000e+00 : f32
    %146 = vector.broadcast %cst_72 : f32 to vector<16x64xf32>
    %147 = arith.addf %146, %145 : vector<16x64xf32>
    %148 = arith.divf %146, %147 : vector<16x64xf32>
    %149 = arith.mulf %143, %148 : vector<16x64xf32>
    %c0_73 = arith.constant 0 : index
    %c0_74 = arith.constant 0 : index
    %150 = vector.load %arg25[%c0_73, %c0_74] : memref<64x64xbf16, #tpu.memory_space<vmem>>, vector<64x64xbf16>
    %151 = arith.truncf %149 : vector<16x64xf32> to vector<16x64xbf16>
    %cst_75 = arith.constant dense<0.000000e+00> : vector<16x64xf32>
    %152 = tpu.matmul %151, %150, %cst_75 {dimension_numbers = #tpu.dot_dimension_numbers<[1], [0], [0], [1], [0, 0, 1, 1], [], []>} : vector<16x64xbf16>, vector<64x64xbf16>, vector<16x64xf32> -> vector<16x64xf32>
    %c0_76 = arith.constant 0 : index
    %c0_77 = arith.constant 0 : index
    %153 = vector.load %arg26[%c0_76, %c0_77] : memref<1x64xf32, #tpu.memory_space<vmem>>, vector<1x64xf32>
    %154 = vector.broadcast %153 : vector<1x64xf32> to vector<16x64xf32>
    %155 = arith.addf %152, %154 : vector<16x64xf32>
    %156 = arith.mulf %109, %155 : vector<16x64xf32>
    %157 = arith.addf %106, %156 : vector<16x64xf32>
    %158 = vector.extract_strided_slice %55 {offsets = [0, 384], sizes = [16, 64], strides = [1, 1]} : vector<16x512xf32> to vector<16x64xf32>
    %159 = vector.extract_strided_slice %55 {offsets = [0, 448], sizes = [16, 64], strides = [1, 1]} : vector<16x512xf32> to vector<16x64xf32>
    %cst_78 = arith.constant dense<0.000000e+00> : vector<16xf32>
    %160 = vector.multi_reduction <add>, %157, %cst_78 [1] : vector<16x64xf32> to vector<16xf32>
    %161 = vector.shape_cast %160 : vector<16xf32> to vector<16x1xf32>
    %cst_79 = arith.constant 6.400000e+01 : f32
    %162 = vector.broadcast %cst_79 : f32 to vector<16x1xf32>
    %163 = arith.divf %161, %162 : vector<16x1xf32>
    %164 = vector.broadcast %163 : vector<16x1xf32> to vector<16x64xf32>
    %165 = arith.subf %157, %164 : vector<16x64xf32>
    %166 = arith.mulf %165, %165 : vector<16x64xf32>
    %cst_80 = arith.constant dense<0.000000e+00> : vector<16xf32>
    %167 = vector.multi_reduction <add>, %166, %cst_80 [1] : vector<16x64xf32> to vector<16xf32>
    %168 = vector.shape_cast %167 : vector<16xf32> to vector<16x1xf32>
    %cst_81 = arith.constant 6.400000e+01 : f32
    %169 = vector.broadcast %cst_81 : f32 to vector<16x1xf32>
    %170 = arith.divf %168, %169 : vector<16x1xf32>
    %171 = vector.broadcast %163 : vector<16x1xf32> to vector<16x64xf32>
    %172 = arith.subf %157, %171 : vector<16x64xf32>
    %cst_82 = arith.constant 9.99999997E-7 : f32
    %173 = vector.broadcast %cst_82 : f32 to vector<16x1xf32>
    %174 = arith.addf %170, %173 : vector<16x1xf32>
    %175 = math.rsqrt %174 : vector<16x1xf32>
    %176 = vector.broadcast %175 : vector<16x1xf32> to vector<16x64xf32>
    %177 = arith.mulf %172, %176 : vector<16x64xf32>
    %cst_83 = arith.constant 1.000000e+00 : f32
    %178 = vector.broadcast %cst_83 : f32 to vector<16x64xf32>
    %179 = arith.addf %178, %159 : vector<16x64xf32>
    %180 = arith.mulf %177, %179 : vector<16x64xf32>
    %181 = arith.addf %180, %158 : vector<16x64xf32>
    %c0_84 = arith.constant 0 : index
    %c0_85 = arith.constant 0 : index
    %182 = vector.load %arg27[%c0_84, %c0_85] : memref<64x8xbf16, #tpu.memory_space<vmem>>, vector<64x8xbf16>
    %183 = arith.truncf %181 : vector<16x64xf32> to vector<16x64xbf16>
    %cst_86 = arith.constant dense<0.000000e+00> : vector<16x8xf32>
    %184 = tpu.matmul %183, %182, %cst_86 {dimension_numbers = #tpu.dot_dimension_numbers<[1], [0], [0], [1], [0, 0, 1, 1], [], []>} : vector<16x64xbf16>, vector<64x8xbf16>, vector<16x8xf32> -> vector<16x8xf32>
    %c0_87 = arith.constant 0 : index
    %c0_88 = arith.constant 0 : index
    %185 = vector.load %arg28[%c0_87, %c0_88] : memref<1x8xf32, #tpu.memory_space<vmem>>, vector<1x8xf32>
    %186 = vector.broadcast %185 : vector<1x8xf32> to vector<16x8xf32>
    %187 = arith.addf %184, %186 : vector<16x8xf32>
    %c0_89 = arith.constant 0 : index
    %c0_90 = arith.constant 0 : index
    %188 = vector.load %arg29[%c0_89, %c0_90] : memref<16x8xf32, #tpu.memory_space<vmem>>, vector<16x8xf32>
    tpu.vector_store %arg29[%c0_89, %c0_90], %187 {strides = array<i32>} : memref<16x8xf32, #tpu.memory_space<vmem>>, vector<16x8xf32>,
    return
  }
}

</mosaic_0001>

<bundles_post_ra>
// kernel: tpu_custom_call.1
= control target key start
LH: loop header
LB: loop body
LE: loop exit
PB: predicated region body
PF: predicated region fallthrough
CT: control target
= control target key end

     0   :  { %s2693_s6 = smov 1   ;;  %s2694_s10 = smov 2   ;;  %s3362_s0 = inlined_call_operand.smem [shape: u32[30], index: -1, kind: input, shape index: {}] }
   0x1   :  { %s2751_s5 = sld [smem:[%s3362_s0]]   ;;  %s2695_s14 = smov 3  }
   0x2   :  { %s2756_s9 = sld [smem:[%s3362_s0 + %s2693_s6]]   ;;  %s2696_s18 = smov 4  }
   0x3   :  { %s2761_s13 = sld [smem:[%s3362_s0 + %s2694_s10]]   ;;  %s2697_s22 = smov 5  }
   0x4   :  { %s2766_s17 = sld [smem:[%s3362_s0 + %s2695_s14]]   ;;  %s2698_s26 = smov 6  }
   0x5   :  { %s2771_s21 = sld [smem:[%s3362_s0 + %s2696_s18]]   ;;  %s2699_s30 = smov 7  }
   0x6   :  { %s2776_s25 = sld [smem:[%s3362_s0 + %s2697_s22]]   ;;  %s2700_s4 = smov 8  }
   0x7   :  { %s2781_s29 = sld [smem:[%s3362_s0 + %s2698_s26]]   ;;  %s2701_s10 = smov 9  }
   0x8   :  { %s2786_s3 = sld [smem:[%s3362_s0 + %s2699_s30]]   ;;  %s2702_s15 = smov 10  }
   0x9   :  { %s2791_s8 = sld [smem:[%s3362_s0 + %s2700_s4]]   ;;  %s2703_s20 = smov 11  }
   0xa   :  { %s2796_s14 = sld [smem:[%s3362_s0 + %s2701_s10]]   ;;  %s2704_s26 = smov 12  }
   0xb   :  { %s2801_s19 = sld [smem:[%s3362_s0 + %s2702_s15]]   ;;  %s2705_s1 = smov 13  }
   0xc   :  { %s2806_s24 = sld [smem:[%s3362_s0 + %s2703_s20]]   ;;  %s2706_s7 = smov 14  }
   0xd   :  { %s2811_s30 = sld [smem:[%s3362_s0 + %s2704_s26]]   ;;  %s2707_s15 = smov 15  }
   0xe   :  { %s2816_s6 = sld [smem:[%s3362_s0 + %s2705_s1]]   ;;  %s2708_s22 = smov 16  }
   0xf   :  { %s2821_s12 = sld [smem:[%s3362_s0 + %s2706_s7]]   ;;  %s2709_s28 = smov 17  }
  0x10   :  { %s2826_s20 = sld [smem:[%s3362_s0 + %s2707_s15]]   ;;  %s2710_s7 = smov 18  }
  0x11   :  { %s2831_s27 = sld [smem:[%s3362_s0 + %s2708_s22]]   ;;  %s2711_s15 = smov 19  }
  0x12   :  { %3365 = sst [smem:[#allocation21_spill]] %s2806_s24  ;;  %s2712_s22 = smov 20  }
  0x13   :  { %3366 = sst [smem:[#allocation22_spill]] %s2811_s30 }
  0x14   :  { %3367 = sst [smem:[#allocation23_spill]] %s2816_s6 }
  0x15   :  { %3368 = sst [smem:[#allocation24_spill]] %s2821_s12 }
  0x16   :  { %3369 = sst [smem:[#allocation25_spill]] %s2826_s20 }
  0x17   :  { %3370 = sst [smem:[#allocation26_spill]] %s2831_s27 }
  0x18   :  { %s2836_s4 = sld [smem:[%s3362_s0 + %s2709_s28]]   ;;  %s2713_s28 = smov 21  }
  0x19   :  { %s2841_s12 = sld [smem:[%s3362_s0 + %s2710_s7]]   ;;  %s2714_s7 = smov 22  }
  0x1a   :  { %s2846_s20 = sld [smem:[%s3362_s0 + %s2711_s15]]   ;;  %s2715_s15 = smov 23  }
  0x1b   :  { %s2851_s27 = sld [smem:[%s3362_s0 + %s2712_s22]]   ;;  %s2716_s22 = smov 24  }
  0x1c   :  { %s2866_s6 = sld [smem:[%s3362_s0 + %s2715_s15]]   ;;  %s2719_s15 = smov 27  }
  0x1d   :  { %s2886_s30 = sld [smem:[%s3362_s0 + %s2719_s15]]  }
  0x1e   :  { %3371 = sst [smem:[#allocation27_spill]] %s2836_s4 }
  0x1f   :  { %3372 = sst [smem:[#allocation28_spill]] %s2841_s12 }
  0x20   :  { %s2856_s4 = sld [smem:[%s3362_s0 + %s2713_s28]]   ;;  %s2717_s28 = smov 25  }
  0x21   :  { %3373 = sst [smem:[#allocation29_spill]] %s2851_s27 }
  0x22   :  { %s2861_s12 = sld [smem:[%s3362_s0 + %s2714_s7]]   ;;  %s2718_s7 = smov 26  }
  0x23   :  { %s2871_s27 = sld [smem:[%s3362_s0 + %s2716_s22]]   ;;  %s2720_s22 = smov 28  }
  0x26   :  { %3374 = sst [smem:[#allocation30_spill]] %s2856_s4 }
  0x27   :  { %s2876_s4 = sld [smem:[%s3362_s0 + %s2717_s28]]   ;;  %s2721_s28 = smov 29  }
  0x28   :  { %3375 = sst [smem:[#allocation31_spill]] %s2861_s12 }
  0x29   :  { %3376 = sst [smem:[#allocation32_spill]] %s2871_s27 }
  0x2a   :  { %s2881_s12 = sld [smem:[%s3362_s0 + %s2718_s7]]  }
  0x2b   :  { %s2891_s27 = sld [smem:[%s3362_s0 + %s2720_s22]]  }
  0x2c   :  { %s2896_s24 = sld [smem:[%s3362_s0 + %s2721_s28]]  }
  0x2d   :  { %64 = vsyncpa [#allocation3], 0 }
  0x2e   :  { %65 = vsyncpa [#allocation5], 0 }
  0x2f   :  { %66 = vsyncpa [#allocation8], 0 }
  0x30   :  { %67 = vsyncpa [#allocation11], 0  ;;  %s91_s7 = sshll.u32 %s2766_s17, 4  ;;  %s92_s7 = int_to_ptr.hbm [resolvable:$true] %s91_s7 }
  0x31   :  { %68 = vsyncpa [#allocation14], 0  ;;  %s2722_s10 = smov [#allocation4]   ;;  %s113_s15 = sshll.u32 %s2776_s25, 4  ;;  %s114_s15 = int_to_ptr.hbm [resolvable:$true] %s113_s15 }
  0x32   :  { %s93_s11 = sshll.u32 %s2722_s10, 4  ;;  %s2467_s16 = sshra.s32 %s92_s7, 4  ;;  %s94_s11 = int_to_ptr.vmem [resolvable:$true] %s93_s11  ;;  %s2468_s16 = int_to_ptr.hbm [resolvable:$true] %s2467_s16 }
  0x33   :  { %s2469_s18 = scalar_lea.hbm %s2468_s16, 1  ;;  %s2471_s0 = scalar_lea.hbm %s2766_s17, 1 }
  0x34   :  { %p2470_p0 = scmp.ne.s32.totalorder %s2468_s16, %s2469_s18  ;;  %p2472_p1 = scmp.lt.s32.totalorder %s2468_s16, %s2766_s17 }
  0x35   :  { %p2473_p2 = scmp.lt.s32.totalorder %s2471_s0, %s2469_s18 }
  0x37   :  { %p2474_p3 = por %p2473_p2, %p2472_p1 }
  0x39   :  { %p2475_p4 = pnand %p2474_p3, %p2470_p0 }
  0x3b   :  { %2478 = shalt.err (!%p2475_p4)
}
  0x3c   :  { %96 = dma.hbm_to_vmem [thread:$0]  %s92_s7, 16, %s94_s11, [#allocation5]  }
  0x3d   :  { %s2723_s22 = smov [#allocation7]   ;;  %s141_s26 = sshll.u32 %s2801_s19, 4  ;;  %s142_s26 = int_to_ptr.hbm [resolvable:$true] %s141_s26 }
  0x3e   :  { %s115_s23 = sshll.u32 %s2723_s22, 4  ;;  %s2491_s28 = sshra.s32 %s114_s15, 4  ;;  %s116_s23 = int_to_ptr.vmem [resolvable:$true] %s115_s23  ;;  %s2492_s28 = int_to_ptr.hbm [resolvable:$true] %s2491_s28 }
  0x3f   :  { %s2493_s1 = scalar_lea.hbm %s2492_s28, 1  ;;  %s2495_s2 = scalar_lea.hbm %s2776_s25, 1 }
  0x40   :  { %p2494_p5 = scmp.ne.s32.totalorder %s2492_s28, %s2493_s1  ;;  %p2496_p6 = scmp.lt.s32.totalorder %s2492_s28, %s2776_s25 }
  0x41   :  { %p2497_p7 = scmp.lt.s32.totalorder %s2495_s2, %s2493_s1 }
  0x43   :  { %p2498_p8 = por %p2497_p7, %p2496_p6 }
  0x45   :  { %p2499_p9 = pnand %p2498_p8, %p2494_p5 }
  0x47   :  { %2502 = shalt.err (!%p2499_p9)
}
  0x48   :  { %118 = dma.hbm_to_vmem [thread:$0]  %s114_s15, 16, %s116_s23, [#allocation8]  }
  0x49   :  { %s2724_s17 = smov [#allocation10]   ;;  %s186_s10 = sshll.u32 %s2866_s6, 4  ;;  %s187_s10 = int_to_ptr.hbm [resolvable:$true] %s186_s10 }
  0x4a   :  { %s143_s7 = sshll.u32 %s2724_s17, 4  ;;  %s2515_s11 = sshra.s32 %s142_s26, 4  ;;  %s144_s7 = int_to_ptr.vmem [resolvable:$true] %s143_s7  ;;  %s2516_s11 = int_to_ptr.hbm [resolvable:$true] %s2515_s11 }
  0x4b   :  { %s2517_s16 = scalar_lea.hbm %s2516_s11, 1  ;;  %s2519_s18 = scalar_lea.hbm %s2801_s19, 1 }
  0x4c   :  { %p2518_p10 = scmp.ne.s32.totalorder %s2516_s11, %s2517_s16  ;;  %p2520_p11 = scmp.lt.s32.totalorder %s2516_s11, %s2801_s19 }
  0x4d   :  { %p2521_p12 = scmp.lt.s32.totalorder %s2519_s18, %s2517_s16 }
  0x4f   :  { %p2522_p13 = por %p2521_p12, %p2520_p11 }
  0x51   :  { %p2523_p0 = pnand %p2522_p13, %p2518_p10 }
  0x53   :  { %2526 = shalt.err (!%p2523_p0)
}
  0x54   :  { %146 = dma.hbm_to_vmem [thread:$0]  %s142_s26, 16, %s144_s7, [#allocation11]  }
  0x55   :  { %s2725_s25 = smov [#allocation13]   ;;  %s77_s0 = sshll.u32 %s2761_s13, 4  ;;  %s2909_s0 = int_to_ptr.hbm [resolvable:$true] %s77_s0 }
  0x56   :  { %s188_s15 = sshll.u32 %s2725_s25, 4  ;;  %s2539_s22 = sshra.s32 %s187_s10, 4  ;;  %s189_s15 = int_to_ptr.vmem [resolvable:$true] %s188_s15  ;;  %s2540_s22 = int_to_ptr.hbm [resolvable:$true] %s2539_s22 }
  0x57   :  { %s2541_s23 = scalar_lea.hbm %s2540_s22, 32  ;;  %s2543_s19 = scalar_lea.hbm %s2866_s6, 32 }
  0x58   :  { %p2542_p1 = scmp.ne.s32.totalorder %s2540_s22, %s2541_s23  ;;  %p2544_p2 = scmp.lt.s32.totalorder %s2540_s22, %s2866_s6 }
  0x59   :  { %p2545_p3 = scmp.lt.s32.totalorder %s2543_s19, %s2541_s23 }
  0x5b   :  { %p2546_p4 = por %p2545_p3, %p2544_p2 }
  0x5d   :  { %p2547_p5 = pnand %p2546_p4, %p2542_p1 }
  0x5f   :  { %2550 = shalt.err (!%p2547_p5)
}
  0x60   :  { %s2726_s26 = smov 64   ;;  %s2727_s28 = smov 4  }
  0x61   :  { %194 = dma.hbm_to_vmem [thread:$0]  %s187_s10, 512, %s189_s15, [#allocation14], %s2726_s26, %s2726_s26, %s2727_s28  }
  0x62   :  { %s2728_s1 = smov [#allocation2]   ;;  %s102_s17 = sshll.u32 %s2771_s21, 4  ;;  %s103_s17 = int_to_ptr.hbm [resolvable:$true] %s102_s17 }
  0x63   :  { %s79_s2 = sshll.u32 %s2728_s1, 4  ;;  %s2563_s7 = sshra.s32 %s2909_s0, 4  ;;  %s80_s2 = int_to_ptr.vmem [resolvable:$true] %s79_s2  ;;  %s2564_s7 = int_to_ptr.hbm [resolvable:$true] %s2563_s7 }
  0x64   :  { %s2565_s6 = scalar_lea.hbm %s2564_s7, 16  ;;  %s2567_s11 = scalar_lea.hbm %s2761_s13, 16 }
  0x65   :  { %p2566_p6 = scmp.ne.s32.totalorder %s2564_s7, %s2565_s6  ;;  %p2568_p7 = scmp.lt.s32.totalorder %s2564_s7, %s2761_s13 }
  0x66   :  { %p2569_p8 = scmp.lt.s32.totalorder %s2567_s11, %s2565_s6 }
  0x68   :  { %p2570_p9 = por %p2569_p8, %p2568_p7 }
  0x6a   :  { %p2571_p10 = pnand %p2570_p9, %p2566_p6 }
  0x6c   :  { %2574 = shalt.err (!%p2571_p10)
}
  0x6d   :  { %s2729_s16 = smov 128   ;;  %s2730_s10 = smov 8  }
  0x6e   :  { %85 = dma.hbm_to_vmem [thread:$0]  %s2909_s0, 256, %s80_s2, [#allocation3], %s2729_s16, %s2729_s16, %s2730_s10  }
  0x6f   :  { %s2731_s18 = smov [#allocation6]   ;;  %s128_s15 = sshll.u32 %s2791_s8, 4  ;;  %s129_s15 = int_to_ptr.hbm [resolvable:$true] %s128_s15 }
  0x70   :  { %s104_s25 = sshll.u32 %s2731_s18, 4  ;;  %s2587_s22 = sshra.s32 %s103_s17, 4  ;;  %s105_s25 = int_to_ptr.vmem [resolvable:$true] %s104_s25  ;;  %s2588_s22 = int_to_ptr.hbm [resolvable:$true] %s2587_s22 }
  0x71   :  { %s2589_s13 = scalar_lea.hbm %s2588_s22, 2  ;;  %s2591_s23 = scalar_lea.hbm %s2771_s21, 2 }
  0x72   :  { %p2590_p11 = scmp.ne.s32.totalorder %s2588_s22, %s2589_s13  ;;  %p2592_p12 = scmp.lt.s32.totalorder %s2588_s22, %s2771_s21 }
  0x73   :  { %p2593_p13 = scmp.lt.s32.totalorder %s2591_s23, %s2589_s13 }
  0x75   :  { %p2594_p0 = por %p2593_p13, %p2592_p12 }
  0x77   :  { %p2595_p1 = pnand %p2594_p0, %p2590_p11 }
  0x79   :  { %2598 = shalt.err (!%p2595_p1)
}
  0x7a   :  { %107 = dma.hbm_to_vmem [thread:$0]  %s103_s17, 32, %s105_s25, [#allocation5]  }
  0x7b   :  { %s167_s0 = sshll.u32 %s2846_s20, 4  ;;  %s2732_s19 = smov [#allocation9]   ;;  %s2925_s0 = int_to_ptr.hbm [resolvable:$true] %s167_s0 }
  0x7c   :  { %s130_s1 = sshll.u32 %s2732_s19, 4  ;;  %s2611_s2 = sshra.s32 %s129_s15, 4  ;;  %s131_s1 = int_to_ptr.vmem [resolvable:$true] %s130_s1  ;;  %s2612_s2 = int_to_ptr.hbm [resolvable:$true] %s2611_s2 }
  0x7d   :  { %s2613_s7 = scalar_lea.hbm %s2612_s2, 1  ;;  %s2615_s6 = scalar_lea.hbm %s2791_s8, 1 }
  0x7e   :  { %p2614_p2 = scmp.ne.s32.totalorder %s2612_s2, %s2613_s7  ;;  %p2616_p3 = scmp.lt.s32.totalorder %s2612_s2, %s2791_s8 }
  0x7f   :  { %p2617_p4 = scmp.lt.s32.totalorder %s2615_s6, %s2613_s7 }
  0x81   :  { %p2618_p5 = por %p2617_p4, %p2616_p3 }
  0x83   :  { %p2619_p6 = pnand %p2618_p5, %p2614_p2 }
  0x85   :  { %2622 = shalt.err (!%p2619_p6)
}
  0x86   :  { %133 = dma.hbm_to_vmem [thread:$0]  %s129_s15, 16, %s131_s1, [#allocation8]  }
  0x87   :  { %s2733_s21 = smov [#allocation12]   ;;  %s201_s11 = sshll.u32 %s2876_s4, 4  ;;  %s202_s11 = int_to_ptr.hbm [resolvable:$true] %s201_s11 }
  0x88   :  { %s169_s17 = sshll.u32 %s2733_s21, 4  ;;  %s2635_s16 = sshra.s32 %s2925_s0, 4  ;;  %s170_s17 = int_to_ptr.vmem [resolvable:$true] %s169_s17  ;;  %s2636_s16 = int_to_ptr.hbm [resolvable:$true] %s2635_s16 }
  0x89   :  { %s2637_s10 = scalar_lea.hbm %s2636_s16, 32  ;;  %s2639_s18 = scalar_lea.hbm %s2846_s20, 32 }
  0x8a   :  { %p2638_p7 = scmp.ne.s32.totalorder %s2636_s16, %s2637_s10  ;;  %p2640_p8 = scmp.lt.s32.totalorder %s2636_s16, %s2846_s20 }
  0x8b   :  { %p2641_p9 = scmp.lt.s32.totalorder %s2639_s18, %s2637_s10 }
  0x8d   :  { %p2642_p10 = por %p2641_p9, %p2640_p8 }
  0x8f   :  { %p2643_p11 = pnand %p2642_p10, %p2638_p7 }
  0x91   :  { %2646 = shalt.err (!%p2643_p11)
}
  0x92   :  { %175 = dma.hbm_to_vmem [thread:$0]  %s2925_s0, 512, %s170_s17, [#allocation11], %s2726_s26, %s2726_s26, %s2727_s28  }
  0x93   :  { %s2734_s8 = smov [#allocation15]   ;;  %s2659_s15 = sshra.s32 %s202_s11, 4  ;;  %s2660_s15 = int_to_ptr.hbm [resolvable:$true] %s2659_s15 }
  0x94   :  { %s203_s25 = sshll.u32 %s2734_s8, 4  ;;  %s2661_s22 = scalar_lea.hbm %s2660_s15, 32  ;;  %s204_s25 = int_to_ptr.vmem [resolvable:$true] %s203_s25 }
  0x95   :  { %p2662_p12 = scmp.ne.s32.totalorder %s2660_s15, %s2661_s22  ;;  %s2663_s20 = scalar_lea.hbm %s2876_s4, 32 }
  0x96   :  { %p2664_p13 = scmp.lt.s32.totalorder %s2660_s15, %s2876_s4  ;;  %p2665_p0 = scmp.lt.s32.totalorder %s2663_s20, %s2661_s22 }
  0x98   :  { %p2666_p1 = por %p2665_p0, %p2664_p13 }
  0x9a   :  { %p2667_p2 = pnand %p2666_p1, %p2662_p12 }
  0x9c   :  { %2670 = shalt.err (!%p2667_p2)
}
  0x9d   :  { %209 = dma.hbm_to_vmem [thread:$0]  %s202_s11, 512, %s204_s25, [#allocation14], %s2726_s26, %s2726_s26, %s2727_s28  }
  0x9e   :  { %2683 = dma.done.wait [#allocation3], 256  }
  0x9f   :  { %2684 = vsyncadd [#allocation3], 4294967040 }
  0xa0   :  { %2685 = dma.done.wait [#allocation5], 48  }
  0xa1   :  { %2686 = vsyncadd [#allocation5], 4294967248 }
  0xa2   :  { %2687 = dma.done.wait [#allocation8], 32  }
  0xa3   :  { %2688 = vsyncadd [#allocation8], 4294967264 }
  0xa4   :  { %2689 = dma.done.wait [#allocation11], 528  }
  0xa5   :  { %2690 = vsyncadd [#allocation11], 4294966768 }
  0xa6   :  { %2691 = dma.done.wait [#allocation14], 1024  }
  0xa7   :  { %2692 = vsyncadd [#allocation14], 4294966272  ;;  %v2735_v0 = vmov 0   ;;  %v283_v1 = vld [vmem:[%s2756_s9] sm:$0xff]  ;;  %v284_v2 = vld [vmem:[%s2756_s9 + $0x8] sm:$0xff]  ;;  %vm265_vm0 = vcmask 1041408  }
  0xa8   :  { %2406 = vset.pattern.permute.xlu0 %v2735_v0  ;;  %v255_v3 = vld [vmem:[#allocation6] sm:$0x3]  ;;  %v253_v5 = vld [vmem:[%s2751_s5] sm:$0xff]  ;;  %v254_v6 = vld [vmem:[%s2751_s5 + $0x8] sm:$0xff]  ;;  %vm261_vm1 = vcmask 31744   ;;  %s3381_s5 = sld [smem:[#allocation21_spill]] }
  0xa9   :  { %288 = vperm.xlu0 %2406, %v283_v1   ;;  %v267_v4 = vsel %vm265_vm0, %v255_v3, 0  ;;  %v256_v7 = vpack.c.bf16 %v254_v6, %v253_v5  ;;  %v2407_v8 = vld [vmem:[#allocation4] ss:$0 sm:$0xff]  ;;  %v2736_v27 = vmov 683565275   ;;  %v2314_v38 = vld [vmem:[%s2786_s3 + $0x38] sm:$0xff] }
  0xaa   :  { %276 = vmatpush.bf16.msra.mxu0 %v267_v4  ;;  %v2737_v29 = vmov 2475754826   ;;  %v2738_v33 = vmov 2131351028   ;;  %v2739_v36 = vmov 2102212464   ;;  %1001 = vmatpush.bf16.msra.mxu1 %v2314_v38 }
  0xab   :  { %v2306_v39 = vld [vmem:[%s2781_s29 + $0x38] sm:$0xff]  ;;  %v2740_v41 = vmov 920167782   ;;  %v2741_v44 = vmov 1326507024   ;;  %v2313_v50 = vld [vmem:[%s2786_s3 + $0x30] sm:$0xff] }
  0xac   :  { %1063 = vmatpush.bf16.msra.mxu2 %v2306_v39  ;;  %v2305_v51 = vld [vmem:[%s2781_s29 + $0x30] sm:$0xff]  ;;  %v2312_v63 = vld [vmem:[%s2786_s3 + $0x28] sm:$0xff]  ;;  %s3382_s9 = sld [smem:[#allocation22_spill]] }
  0xad   :  { %2039 = vmatmul.msk.bf16.vlgmr.msra.gmra.mxu0 %vm261_vm1, %v256_v7  ;;  %s3386_s4 = sld [smem:[#allocation25_spill]] }
  0xae   :  { %1002 = vmatpush.bf16.msra.mxu1 %v2313_v50  ;;  %s3387_s28 = sld [smem:[#allocation26_spill]] }
  0xaf   :  { %s3388_s13 = sld [smem:[#allocation28_spill]] }
  0xb0   :  { %1064 = vmatpush.bf16.msra.mxu2 %v2305_v51  ;;  %s3389_s23 = sld [smem:[#allocation29_spill]] }
  0xb1   :  { %293 = vperm.xlu0 %2406, %v284_v2   ;;  %v2304_v2 = vld [vmem:[%s2781_s29 + $0x28] sm:$0xff]  ;;  %s3390_s0 = sld [smem:[#allocation30_spill]] }
  0xb2   :  { %1003 = vmatpush.bf16.msra.mxu1 %v2312_v63  ;;  %s3391_s19 = sld [smem:[#allocation31_spill]] }
  0xb3   :  { %s3392_s1 = sld [smem:[#allocation32_spill]] }
  0xb4   :  { %1065 = vmatpush.bf16.msra.mxu2 %v2304_v2  ;;  %v2308_v2 = vld [vmem:[%s2786_s3 + $0x8] sm:$0xff] }
 0x11b   :  { %v289_v9 = vpop.permute.xlu0 %288 }
 0x11c   :  { %v2947_v10 = vmul.f32 %v2407_v8, %v289_v9 }
 0x11e   :  { %v304_v11 = vand.u32 2139095040, %v2947_v10  ;;  %v301_v13 = vand.u32 2147483647, %v2947_v10 }
 0x120   :  { %v305_v12 = vshrl.u32 %v304_v11, 23  ;;  %v308_v18 = vand.u32 8388607, %v301_v13 }
 0x122   :  { %v2040_v14 = vadd.s32 4294967169, %v305_v12  ;;  %v309_v23 = vor.u32 8388608, %v308_v18 }
 0x123   :  { %v294_v15 = vpop.permute.xlu0 %293 }
 0x124   :  { %v311_v16 = vadd.s32 1, %v2040_v14  ;;  %v2951_v17 = vmul.f32 %v2407_v8, %v294_v15  ;;  %v2980_v55 = vshll.u32 %v309_v23, 8  ;;  %v2311_v14 = vld [vmem:[%s2786_s3 + $0x20] sm:$0xff] }
 0x125   :  { %1004 = vmatpush.bf16.msra.mxu1 %v2311_v14 }
 0x126   :  { %vm312_vm2 = vcmp.gt.s32.totalorder %v311_v16, 0  ;;  %v455_v20 = vand.u32 2147483647, %v2951_v17  ;;  %v458_v21 = vand.u32 2139095040, %v2951_v17  ;;  %v3000_v4 = vand.u32 65535, %v2980_v55 }
 0x127   :  { %v313_v19 = vsel %vm312_vm2, %v311_v16, 0  ;;  %v3022_v18 = vshrl.u32 %v2980_v55, 16 }
 0x128   :  { %v315_v22 = vand.u32 31, %v313_v19  ;;  %v459_v25 = vshrl.u32 %v458_v21, 23  ;;  %v2957_v26 = vshrl.u32 %v313_v19, 5  ;;  %v462_v31 = vand.u32 8388607, %v455_v20  ;;  %v2303_v19 = vld [vmem:[%s2781_s29 + $0x20] sm:$0xff] }
 0x129   :  { %1066 = vmatpush.bf16.msra.mxu2 %v2303_v19 }
 0x12a   :  { %v316_v24 = vsub.s32 32, %v315_v22  ;;  %v318_v28 = vshll.u32 %v2736_v27, %v315_v22  ;;  %v321_v30 = vshll.u32 %v2737_v29, %v315_v22  ;;  %v324_v35 = vshll.u32 %v2738_v33, %v315_v22 }
 0x12b   :  { %v327_v40 = vshll.u32 %v2739_v36, %v315_v22  ;;  %v330_v43 = vshll.u32 %v2740_v41, %v315_v22  ;;  %v2043_v49 = vadd.s32 4294967169, %v459_v25  ;;  %vm333_vm3 = vcmp.lt.s32.totalorder %v2957_v26, 1 }
 0x12c   :  { %v319_v32 = vshrl.u32 %v2737_v29, %v316_v24  ;;  %v322_v34 = vshrl.u32 %v2738_v33, %v316_v24  ;;  %v325_v37 = vshrl.u32 %v2739_v36, %v316_v24  ;;  %v328_v42 = vshrl.u32 %v2740_v41, %v316_v24 }
 0x12d   :  { %v331_v45 = vshrl.u32 %v2741_v44, %v316_v24  ;;  %vm335_vm4 = vcmp.lt.s32.totalorder %v2957_v26, 3  ;;  %vm336_vm5 = vcmp.lt.s32.totalorder %v2957_v26, 4  ;;  %v463_v58 = vor.u32 8388608, %v462_v31 }
 0x12e   :  { %v320_v46 = vor.u32 %v319_v32, %v318_v28  ;;  %v323_v47 = vor.u32 %v322_v34, %v321_v30  ;;  %v326_v48 = vor.u32 %v325_v37, %v324_v35  ;;  %v329_v52 = vor.u32 %v328_v42, %v327_v40  ;;  %v2310_v37 = vld [vmem:[%s2786_s3 + $0x18] sm:$0xff] }
 0x12f   :  { %v332_v53 = vor.u32 %v331_v45, %v330_v43  ;;  %v465_v59 = vadd.s32 1, %v2043_v49  ;;  %vm334_vm6 = vcmp.lt.s32.totalorder %v2957_v26, 2  ;;  %v317_v7 = vshrl.u32 %v2736_v27, %v316_v24  ;;  %v2302_v43 = vld [vmem:[%s2781_s29 + $0x18] sm:$0xff]  ;;  %1005 = vmatpush.bf16.msra.mxu1 %v2310_v37 }
 0x130   :  { %v345_v54 = vsel %vm333_vm3, %v323_v47, %v326_v48  ;;  %v342_v56 = vsel %vm336_vm5, %v329_v52, 920167782  ;;  %v341_v60 = vsel %vm333_vm3, %v320_v46, %v323_v47  ;;  %v338_v3 = vsel %vm336_vm5, %v326_v48, 2102212464  ;;  %1067 = vmatpush.bf16.msra.mxu2 %v2302_v43 }
 0x131   :  { %v346_v57 = vsel %vm336_vm5, %v332_v53, 1326507024  ;;  %v343_v61 = vsel %vm335_vm4, %v326_v48, %v342_v56  ;;  %vm466_vm7 = vcmp.gt.s32.totalorder %v465_v59, 0  ;;  %v3007_v11 = vshll.u32 %v463_v58, 8  ;;  %v2309_v56 = vld [vmem:[%s2786_s3 + $0x10] sm:$0xff] }
 0x132   :  { %v347_v62 = vsel %vm335_vm4, %v329_v52, %v346_v57  ;;  %v3005_v8 = vsel %vm334_vm6, %v341_v60, %v343_v61  ;;  %v467_v9 = vsel %vm466_vm7, %v465_v59, 0  ;;  %v3015_v15 = vsel %vm333_vm3, %v317_v7, %v320_v46 }
 0x133   :  { %v348_v1 = vsel %vm334_vm6, %v345_v54, %v347_v62  ;;  %v3019_v16 = vsel %vm335_vm4, %v323_v47, %v338_v3  ;;  %v374_v23 = vand.u32 65535, %v3005_v8  ;;  %v469_v24 = vand.u32 31, %v467_v9  ;;  %1006 = vmatpush.bf16.msra.mxu1 %v2309_v56 }
 0x134   :  { %v352_v5 = vand.u32 65535, %v348_v1  ;;  %v353_v6 = vshrl.u32 %v348_v1, 16  ;;  %v375_v28 = vshrl.u32 %v3005_v8, 16  ;;  %v3033_v30 = vand.u32 65535, %v3007_v11 }
 0x135   :  { %v3036_v31 = vshrl.u32 %v3007_v11, 16  ;;  %v3039_v34 = vshrl.u32 %v467_v9, 5  ;;  %v3041_v35 = vsub.s32 32, %v469_v24  ;;  %v472_v40 = vshll.u32 %v2736_v27, %v469_v24  ;;  %v2300_v9 = vld [vmem:[%s2781_s29 + $0x8] sm:$0xff] }
 0x136   :  { %v3010_v12 = vmul.u32 %v353_v6, %v3000_v4  ;;  %v354_v21 = vmul.u32 %v352_v5, %v3000_v4  ;;  %v3029_v25 = vmul.u32 %v352_v5, %v3022_v18  ;;  %v357_v32 = vmul.u32 %v353_v6, %v3022_v18 }
 0x137   :  { %v475_v42 = vshll.u32 %v2737_v29, %v469_v24  ;;  %v473_v45 = vshrl.u32 %v2737_v29, %v3041_v35  ;;  %v476_v46 = vshrl.u32 %v2738_v33, %v3041_v35  ;;  %v478_v47 = vshll.u32 %v2738_v33, %v469_v24  ;;  %1007 = vmatpush.bf16.msra.mxu1 %v2308_v2 }
 0x138   :  { %v358_v22 = vshll.u32 %v3010_v12, 16  ;;  %v481_v48 = vshll.u32 %v2739_v36, %v469_v24  ;;  %v479_v49 = vshrl.u32 %v2739_v36, %v3041_v35  ;;  %v482_v50 = vshrl.u32 %v2740_v41, %v3041_v35 }
 0x139   :  { %v484_v51 = vshll.u32 %v2740_v41, %v469_v24  ;;  %v485_v52 = vshrl.u32 %v2741_v44, %v3041_v35  ;;  %v360_v29 = vshll.u32 %v3029_v25, 16  ;;  %v3062_v54 = vor.u32 %v473_v45, %v472_v40  ;;  %v2301_v41 = vld [vmem:[%s2781_s29 + $0x10] sm:$0xff]  ;;  %v2307_v45 = vld [vmem:[%s2786_s3] sm:$0xff]  ;;  %s3384_s3 = sld [smem:[#allocation24_spill]] }
 0x13a   :  { %vm362_vm8 = vc.u32 %v354_v21, %v358_v22  ;;  %v364_v39 = vadd.s32 %v358_v22, %v354_v21  ;;  %v3064_v33 = vor.u32 %v476_v46, %v475_v42  ;;  %v3067_v57 = vor.u32 %v479_v49, %v478_v47  ;;  %1068 = vmatpush.bf16.msra.mxu2 %v2301_v41 }
 0x13b   :  { %v363_v38 = vsel %vm362_vm8, 1, %v2735_v0  ;;  %v483_v36 = vor.u32 %v482_v50, %v481_v48  ;;  %v486_v58 = vor.u32 %v485_v52, %v484_v51  ;;  %vm487_vm9 = vcmp.lt.s32.totalorder %v3039_v34, 1  ;;  %1008 = vmatpush.bf16.msra.mxu1 %v2307_v45 }
 0x13c   :  { %v365_v53 = vadd.s32 %v363_v38, %v357_v32  ;;  %v3074_v44 = vmul.u32 %v375_v28, %v3000_v4  ;;  %vm490_vm10 = vcmp.lt.s32.totalorder %v3039_v34, 4  ;;  %v495_v59 = vsel %vm487_vm9, %v3062_v54, %v3064_v33 }
 0x13d   :  { %vm366_vm11 = vc.u32 %v364_v39, %v360_v29  ;;  %vm489_vm12 = vcmp.lt.s32.totalorder %v3039_v34, 3  ;;  %v496_v60 = vsel %vm490_vm10, %v483_v36, 920167782  ;;  %v499_v61 = vsel %vm487_vm9, %v3064_v33, %v3067_v57 }
 0x13e   :  { %v500_v62 = vsel %vm490_vm10, %v486_v58, 1326507024  ;;  %vm488_vm13 = vcmp.lt.s32.totalorder %v3039_v34, 2  ;;  %v497_v63 = vsel %vm489_vm12, %v3067_v57, %v496_v60  ;;  %v367_v3 = vsel %vm366_vm11, 1, %v2735_v0  ;;  %1069 = vmatpush.bf16.msra.mxu2 %v2300_v9 }
 0x13f   :  { %v501_v1 = vsel %vm489_vm12, %v483_v36, %v500_v62  ;;  %v3101_v5 = vmul.u32 %v374_v23, %v3022_v18  ;;  %v498_v6 = vsel %vm488_vm13, %v495_v59, %v497_v63  ;;  %v369_v14 = vadd.s32 %v367_v3, %v365_v53 }
 0x140   :  { %v502_v7 = vsel %vm488_vm13, %v499_v61, %v501_v1  ;;  %v529_v22 = vshrl.u32 %v498_v6, 16  ;;  %v380_v24 = vshll.u32 %v3074_v44, 16  ;;  %v3113_v32 = vsel %vm334_vm6, %v3015_v15, %v3019_v16  ;;  %v2299_v15 = vld [vmem:[%s2781_s29] sm:$0xff]  ;;  %s3383_s29 = sld [smem:[#allocation23_spill]] }
 0x141   :  { %v506_v19 = vand.u32 65535, %v502_v7  ;;  %v507_v21 = vshrl.u32 %v502_v7, 16  ;;  %v528_v37 = vand.u32 65535, %v498_v6  ;;  %v359_v38 = vshrl.u32 %v3010_v12, 16 }
 0x142   :  { %v376_v39 = vmul.u32 %v374_v23, %v3000_v4  ;;  %v379_v40 = vmul.u32 %v375_v28, %v3022_v18  ;;  %v531_v26 = vmul.u32 %v529_v22, %v3033_v30  ;;  %v361_v12 = vshrl.u32 %v3029_v25, 16  ;;  %1070 = vmatpush.bf16.msra.mxu2 %v2299_v15 }
 0x143   :  { %v509_v42 = vmul.u32 %v507_v21, %v3033_v30  ;;  %v510_v43 = vmul.u32 %v506_v19, %v3036_v31  ;;  %v370_v16 = vadd.s32 %v369_v14, %v359_v38  ;;  %v382_v46 = vshll.u32 %v3101_v5, 16 }
 0x144   :  { %v508_v4 = vmul.u32 %v506_v19, %v3033_v30  ;;  %v511_v8 = vmul.u32 %v507_v21, %v3036_v31  ;;  %vm384_vm14 = vc.u32 %v376_v39, %v380_v24  ;;  %v532_v28 = vmul.u32 %v528_v37, %v3036_v31 }
 0x145   :  { %v512_v18 = vshll.u32 %v509_v42, 16  ;;  %v514_v23 = vshll.u32 %v510_v43, 16  ;;  %v385_v47 = vsel %vm384_vm14, 1, %v2735_v0  ;;  %v386_v48 = vadd.s32 %v380_v24, %v376_v39 }
 0x146   :  { %v387_v50 = vadd.s32 %v385_v47, %v379_v40  ;;  %v534_v25 = vshll.u32 %v531_v26, 16  ;;  %v530_v52 = vmul.u32 %v528_v37, %v3033_v30  ;;  %v381_v29 = vshrl.u32 %v3074_v44, 16 }
 0x147   :  { %vm516_vm15 = vc.u32 %v508_v4, %v512_v18  ;;  %v518_v49 = vadd.s32 %v512_v18, %v508_v4  ;;  %vm388_vm0 = vc.u32 %v386_v48, %v382_v46  ;;  %v533_v56 = vmul.u32 %v529_v22, %v3036_v31 }
 0x148   :  { %v517_v51 = vsel %vm516_vm15, 1, %v2735_v0  ;;  %v389_v36 = vsel %vm388_vm0, 1, %v2735_v0  ;;  %v371_v58 = vadd.s32 %v370_v16, %v361_v12  ;;  %v513_v59 = vshrl.u32 %v509_v42, 16 }
 0x149   :  { %v519_v53 = vadd.s32 %v517_v51, %v511_v8  ;;  %vm520_vm1 = vc.u32 %v518_v49, %v514_v23  ;;  %v391_v41 = vadd.s32 %v389_v36, %v387_v50  ;;  %v536_v62 = vshll.u32 %v532_v28, 16 }
 0x14a   :  { %v521_v60 = vsel %vm520_vm1, 1, %v2735_v0  ;;  %vm538_vm2 = vc.u32 %v530_v52, %v534_v25  ;;  %v540_v63 = vadd.s32 %v534_v25, %v530_v52  ;;  %v492_v30 = vsel %vm490_vm10, %v3067_v57, 2102212464 }
 0x14b   :  { %v523_v61 = vadd.s32 %v521_v60, %v519_v53  ;;  %v383_v44 = vshrl.u32 %v3101_v5, 16  ;;  %v392_v1 = vadd.s32 %v391_v41, %v381_v29  ;;  %v539_v31 = vsel %vm538_vm2, 1, %v2735_v0 }
 0x14c   :  { %v390_v2 = vadd.s32 %v386_v48, %v382_v46  ;;  %v541_v6 = vadd.s32 %v539_v31, %v533_v56  ;;  %vm542_vm3 = vc.u32 %v540_v63, %v536_v62  ;;  %v471_v7 = vshrl.u32 %v2736_v27, %v3041_v35 }
 0x14d   :  { %v524_v3 = vadd.s32 %v523_v61, %v513_v59  ;;  %v393_v9 = vadd.s32 %v392_v1, %v383_v44  ;;  %v515_v14 = vshrl.u32 %v510_v43, 16  ;;  %v543_v19 = vsel %vm542_vm3, 1, %v2735_v0 }
 0x14e   :  { %vm396_vm4 = vc.u32 %v371_v58, %v390_v2  ;;  %v535_v21 = vshrl.u32 %v531_v26, 16  ;;  %v545_v22 = vadd.s32 %v543_v19, %v541_v6  ;;  %v491_v57 = vsel %vm487_vm9, %v471_v7, %v3062_v54 }
 0x14f   :  { %v493_v5 = vsel %vm489_vm12, %v3064_v33, %v492_v30  ;;  %v397_v24 = vadd.s32 1, %v393_v9  ;;  %v525_v37 = vadd.s32 %v524_v3, %v515_v14  ;;  %v394_v27 = vmul.u32 %v2980_v55, %v3113_v32 }
 0x150   :  { %v537_v35 = vshrl.u32 %v532_v28, 16  ;;  %v546_v38 = vadd.s32 %v545_v22, %v535_v21  ;;  %v544_v0 = vadd.s32 %v540_v63, %v536_v62  ;;  %v494_v40 = vsel %vm488_vm13, %v491_v57, %v493_v5 }
 0x151   :  { %v398_v39 = vsel %vm396_vm4, %v397_v24, %v393_v9  ;;  %v548_v26 = vmul.u32 %v3007_v11, %v494_v40  ;;  %v395_v50 = vadd.s32 %v390_v2, %v371_v58  ;;  %vm303_vm10 = vcmp.lt.s32.totalorder %v2947_v10, 0 }
 0x152   :  { %v399_v42 = vadd.s32 %v398_v39, %v394_v27  ;;  %v547_v43 = vadd.s32 %v546_v38, %v537_v35  ;;  %vm550_vm5 = vc.u32 %v525_v37, %v544_v0  ;;  %v549_v60 = vadd.s32 %v544_v0, %v525_v37 }
 0x153   :  { %vm3164_vm11 = vcmp.le.f32.partialorder %v301_v13, 0.7853982  ;;  %vm457_vm12 = vcmp.lt.s32.totalorder %v2951_v17, 0  ;;  %vm3177_vm13 = vcmp.le.f32.partialorder %v455_v20, 0.7853982  ;;  %vm1160_vm14 = vcmask 523264  }
 0x154   :  { %v400_v54 = vadd.s32 536870912, %v399_v42  ;;  %v551_v45 = vadd.s32 1, %v547_v43 }
 0x156   :  { %v401_v33 = vshrl.u32 %v400_v54, 30  ;;  %v552_v15 = vsel %vm550_vm5, %v551_v45, %v547_v43 }
 0x157   :  { %v553_v12 = vadd.s32 %v552_v15, %v548_v26 }
 0x158   :  { %v402_v16 = vshll.u32 %v401_v33, 30  ;;  %v425_v24 = vsub.s32 4, %v401_v33 }
 0x159   :  { %v554_v46 = vadd.s32 536870912, %v553_v12 }
 0x15a   :  { %v403_v55 = vsub.s32 %v399_v42, %v402_v16  ;;  %v426_v40 = vsel %vm303_vm10, %v425_v24, %v401_v33  ;;  %v2408_v16 = vld [vmem:[#allocation7] ss:$0 sm:$0xff] }
 0x15b   :  { %v3158_v32 = vshrl.u32 %v554_v46, 30  ;;  %v428_v20 = vsel %vm3164_vm11, 0, %v426_v40 }
 0x15c   :  { %vm404_vm6 = vcmp.lt.s32.totalorder %v403_v55, 0  ;;  %v405_v4 = vsub.s32 0, %v403_v55 }
 0x15d   :  { %v556_v34 = vshll.u32 %v3158_v32, 30  ;;  %v579_v13 = vsub.s32 4, %v3158_v32 }
 0x15e   :  { %v406_v8 = vsel %vm404_vm6, %v405_v4, %v403_v55 }
 0x15f   :  { %v407_v18 = vclz %v406_v8  ;;  %v557_v23 = vsub.s32 %v553_v12, %v556_v34  ;;  %v580_v12 = vsel %vm457_vm12, %v579_v13, %v3158_v32 }
 0x160   :  { %v582_v33 = vsel %vm3177_vm13, 0, %v580_v12 }
 0x161   :  { %v2041_v28 = vadd.s32 4294967294, %v407_v18  ;;  %vm558_vm7 = vcmp.lt.s32.totalorder %v557_v23, 0  ;;  %v559_v47 = vsub.s32 0, %v557_v23 }
 0x163   :  { %vm2042_vm8 = vcmp.lt.s32.totalorder %v2041_v28, 0  ;;  %v560_v11 = vsel %vm558_vm7, %v559_v47, %v557_v23 }
 0x164   :  { %v410_v48 = vsel %vm2042_vm8, 0, %v2041_v28  ;;  %v561_v49 = vclz %v560_v11  ;;  %v770_v11 = vadd.s32 3, %v428_v20 }
 0x165   :  { %v411_v25 = vsub.s32 32, %v410_v48  ;;  %v415_v51 = vsub.s32 4294967266, %v410_v48  ;;  %v412_v29 = vshll.u32 %v403_v55, %v410_v48 }
 0x166   :  { %v2044_v52 = vadd.s32 4294967294, %v561_v49 }
 0x167   :  { %v413_v53 = vshrl.u32 %v395_v50, %v411_v25  ;;  %v416_v56 = vadd.s32 127, %v415_v51  ;;  %v445_v50 = vand.u32 3, %v428_v20  ;;  %v925_v51 = vadd.s32 3, %v582_v33 }
 0x168   :  { %vm2045_vm9 = vcmp.lt.s32.totalorder %v2044_v52, 0 }
 0x169   :  { %v414_v36 = vor.u32 %v413_v53, %v412_v29  ;;  %v417_v41 = vshll.u32 %v416_v56, 23  ;;  %v564_v59 = vsel %vm2045_vm9, 0, %v2044_v52  ;;  %vm446_vm15 = vcmp.lt.s32.totalorder %v445_v50, 2 }
 0x16a   :  { %v565_v61 = vsub.s32 32, %v564_v59  ;;  %v569_v62 = vsub.s32 4294967266, %v564_v59  ;;  %v566_v30 = vshll.u32 %v557_v23, %v564_v59  ;;  %v278_v23 = vpop.f32.mrf.mxu0  ;;  %vm447_vm0 = vcmp.eq.s32.totalorder %v445_v50, 0 }
 0x16b   :  { %v418_v63 = vor.u32 4788187, %v417_v41  ;;  %v421_v3 = vcvt.s32.f32 %v414_v36  ;;  %v3191_v48 = vadd.f32 %v2408_v16, %v278_v23  ;;  %v771_v41 = vand.u32 3, %v770_v11 }
 0x16c   :  { %v567_v44 = vshrl.u32 %v549_v60, %v565_v61  ;;  %v570_v1 = vadd.s32 127, %v569_v62  ;;  %v926_v62 = vand.u32 3, %v925_v51  ;;  %vm450_vm1 = vcmp.eq.s32.totalorder %v445_v50, 2 }
 0x16d   :  { %v419_v31 = vand.u32 2147483647, %v418_v63  ;;  %v1419_v52 = vsel %vm1160_vm14, %v3191_v48, 0.0  ;;  %v599_v63 = vand.u32 3, %v582_v33  ;;  %vm772_vm2 = vcmp.lt.s32.totalorder %v771_v41, 2 }
 0x16e   :  { %v568_v58 = vor.u32 %v567_v44, %v566_v30  ;;  %v571_v2 = vshll.u32 %v570_v1, 23  ;;  %1420 = vadd.xlane.f32.xlu1 %v1419_v52  ;;  %vm773_vm3 = vcmp.eq.s32.totalorder %v771_v41, 0  ;;  %vm776_vm4 = vcmp.eq.s32.totalorder %v771_v41, 2  ;;  %v1178_v41 = vld [vmem:[#allocation2] sm:$0xff] }
 0x16f   :  { %v422_v6 = vmul.f32 %v421_v3, %v419_v31  ;;  %vm927_vm5 = vcmp.lt.s32.totalorder %v926_v62, 2  ;;  %vm600_vm6 = vcmp.lt.s32.totalorder %v599_v63, 2  ;;  %vm601_vm7 = vcmp.eq.s32.totalorder %v599_v63, 0 }
 0x170   :  { %v572_v7 = vor.u32 4788187, %v571_v2  ;;  %v575_v19 = vcvt.s32.f32 %v568_v58  ;;  %vm928_vm8 = vcmp.eq.s32.totalorder %v926_v62, 0  ;;  %vm931_vm9 = vcmp.eq.s32.totalorder %v926_v62, 2 }
 0x171   :  { %v423_v9 = vxor.u32 2147483648, %v422_v6 }
 0x172   :  { %v573_v14 = vand.u32 2147483647, %v572_v7  ;;  %v280_v31 = vpop.f32.mrf.mxu0 }
 0x173   :  { %v424_v22 = vsel %vm303_vm10, %v423_v9, %v422_v6  ;;  %v3195_v3 = vadd.f32 %v2408_v16, %v280_v31  ;;  %vm604_vm10 = vcmp.eq.s32.totalorder %v599_v63, 2 }
 0x174   :  { %v427_v57 = vsel %vm3164_vm11, %v2947_v10, %v424_v22  ;;  %v576_v5 = vmul.f32 %v575_v19, %v573_v14  ;;  %vm444_vm11 = vweird.f32 %v2947_v10 }
 0x175   :  { %v429_v37 = vmul.f32 %v427_v57, %v427_v57  ;;  %v1422_v9 = vsel %vm1160_vm14, %v3195_v3, 0.0 }
 0x176   :  { %v577_v27 = vxor.u32 2147483648, %v576_v5  ;;  %1423 = vadd.xlane.f32.xlu1 %v1422_v9 }
 0x177   :  { %v430_v35 = vmul.f32 -0.001358992, %v429_v37  ;;  %v437_v38 = vmul.f32 -0.00019511016, %v429_v37 }
 0x178   :  { %v578_v0 = vsel %vm457_vm12, %v577_v27, %v576_v5  ;;  %vm598_vm12 = vweird.f32 %v2951_v17 }
 0x179   :  { %v431_v42 = vadd.f32 0.041655596, %v430_v35  ;;  %v438_v43 = vadd.f32 0.008332121, %v437_v38  ;;  %v581_v54 = vsel %vm3177_vm13, %v2951_v17, %v578_v0 }
 0x17a   :  { %v583_v45 = vmul.f32 %v581_v54, %v581_v54 }
 0x17b   :  { %v432_v26 = vmul.f32 %v431_v42, %v429_v37  ;;  %v439_v15 = vmul.f32 %v438_v43, %v429_v37 }
 0x17c   :  { %v584_v46 = vmul.f32 -0.001358992, %v583_v45  ;;  %v591_v55 = vmul.f32 -0.00019511016, %v583_v45 }
 0x17d   :  { %v433_v4 = vadd.f32 -0.4999988, %v432_v26  ;;  %v440_v34 = vadd.f32 -0.16666654, %v439_v15 }
 0x17e   :  { %v585_v8 = vadd.f32 0.041655596, %v584_v46  ;;  %v592_v18 = vadd.f32 0.008332121, %v591_v55 }
 0x17f   :  { %v434_v28 = vmul.f32 %v433_v4, %v429_v37  ;;  %v441_v47 = vmul.f32 %v440_v34, %v429_v37 }
 0x180   :  { %v586_v32 = vmul.f32 %v585_v8, %v583_v45  ;;  %v593_v49 = vmul.f32 %v592_v18, %v583_v45 }
 0x181   :  { %v442_v25 = vadd.f32 1.0, %v441_v47  ;;  %v435_v29 = vadd.f32 1.0, %v434_v28  ;;  %v2409_v47 = vld [vmem:[#allocation9] ss:$0 sm:$0xff] }
 0x182   :  { %v587_v53 = vadd.f32 -0.4999988, %v586_v32  ;;  %v594_v56 = vadd.f32 -0.16666654, %v593_v49  ;;  %v2318_v32 = vld [vmem:[%s2796_s14 + $0x18] sm:$0xff] }
 0x183   :  { %v443_v36 = vmul.f32 %v442_v25, %v427_v57  ;;  %v451_v30 = vxor.u32 2147483648, %v435_v29  ;;  %1168 = vmatpush.bf16.msra.mxu3 %v2318_v32  ;;  %v2317_v25 = vld [vmem:[%s2796_s14 + $0x10] sm:$0xff]  ;;  %v2202_v32 = vld [vmem:[%s3383_s29 + $0x78] sm:$0xf0] }
 0x184   :  { %v588_v59 = vmul.f32 %v587_v53, %v583_v45  ;;  %v595_v60 = vmul.f32 %v594_v56, %v583_v45  ;;  %v2316_v53 = vld [vmem:[%s2796_s14 + $0x8] sm:$0xff] }
 0x185   :  { %v448_v61 = vxor.u32 2147483648, %v443_v36  ;;  %v778_v19 = vsel %vm776_vm4, %v451_v30, %v443_v36  ;;  %v452_v21 = vsel %vm450_vm1, %v451_v30, %v443_v36  ;;  %v2319_v36 = vld [vmem:[%s3381_s5] sm:$0xff] }
 0x186   :  { %v589_v44 = vadd.f32 1.0, %v588_v59  ;;  %v596_v1 = vadd.f32 1.0, %v595_v60  ;;  %v2315_v59 = vld [vmem:[%s2796_s14] sm:$0xff]  ;;  %v1179_v60 = vld [vmem:[#allocation2 + $0x8] sm:$0xff]  ;;  %1204 = vmatpush.bf16.msrb.mxu0 %v2319_v36  ;;  %v2331_v36 = vld [vmem:[%s3383_s29 + $0x54] sm:$0xf0] }
 0x187   :  { %v775_v6 = vsel %vm773_vm3, %v435_v29, %v448_v61  ;;  %v449_v7 = vsel %vm447_vm0, %v435_v29, %v448_v61  ;;  %1169 = vmatpush.bf16.msra.mxu3 %v2317_v25  ;;  %v1182_v62 = vpack.c.bf16 %v1179_v60, %v1178_v41  ;;  %v2176_v25 = vld [vmem:[%s3383_s29 + $0x40] sm:$0xf]  ;;  %s3385_s14 = sld [smem:[#allocation27_spill]] }
 0x188   :  { %v597_v58 = vmul.f32 %v596_v1, %v581_v54  ;;  %v605_v2 = vxor.u32 2147483648, %v589_v44  ;;  %v779_v22 = vsel %vm772_vm2, %v775_v6, %v778_v19  ;;  %v453_v57 = vsel %vm446_vm15, %v449_v7, %v452_v21 }
 0x189   :  { %v780_v13 = vsel %vm444_vm11, nan, %v779_v22  ;;  %v454_v0 = vsel %vm444_vm11, nan, %v453_v57  ;;  %v2742_v54 = vmov 64.0   ;;  %vm1193_vm15 = vcmask 130048  }
 0x18a   :  { %v602_v14 = vxor.u32 2147483648, %v597_v58  ;;  %v933_v24 = vsel %vm931_vm9, %v605_v2, %v597_v58  ;;  %v606_v27 = vsel %vm604_vm10, %v605_v2, %v597_v58  ;;  %2421 = vrcp.f32 %v2742_v54  ;;  %2139 = vmatmul.msk.bf16.vlgmr.msrb.gmra.mxu0 %vm1193_vm15, %v1182_v62  ;;  %v2186_v62 = vld [vmem:[%s3383_s29 + $0x58] sm:$0xf0] }
 0x18b   :  { %1170 = vmatpush.bf16.msra.mxu3 %v2316_v53  ;;  %v2178_v53 = vld [vmem:[%s3383_s29 + $0x50] sm:$0xf0] }
 0x18c   :  { %v930_v5 = vsel %vm928_vm8, %v589_v44, %v602_v14  ;;  %v603_v37 = vsel %vm601_vm7, %v589_v44, %v602_v14 }
 0x18d   :  { %v934_v35 = vsel %vm927_vm5, %v930_v5, %v933_v24  ;;  %v607_v38 = vsel %vm600_vm6, %v603_v37, %v606_v27 }
 0x18e   :  { %v935_v39 = vsel %vm598_vm12, nan, %v934_v35  ;;  %v608_v40 = vsel %vm598_vm12, nan, %v607_v38 }
 0x18f   :  { %v952_v42 = vpack.c.bf16 %v935_v39, %v780_v13  ;;  %v625_v43 = vpack.c.bf16 %v608_v40, %v454_v0  ;;  %1171 = vmatpush.bf16.msra.mxu3 %v2315_v59 }
 0x190   :  { %v2422_v45 = vpop.eup %2421 }
 0x191   :  { %1009 = vmatmul.bf16.vlgmr.msra.gmra.mxu1 %v952_v42  ;;  %1071 = vmatmul.bf16.vlgmr.msra.gmra.mxu2 %v625_v43  ;;  %v1426_v26 = vmul.f32 64.0, %v2422_v45  ;;  %vm1430_vm13 = vweird.f32 %v2422_v45 }
 0x193   :  { %v1427_v15 = vsub.f32 1.0, %v1426_v26 }
 0x195   :  { %v1428_v10 = vmul.f32 %v2422_v45, %v1427_v15  ;;  %v2411_v15 = vld [vmem:[#allocation10] ss:$0 sm:$0xff] }
 0x197   :  { %v1429_v12 = vadd.f32 %v2422_v45, %v1428_v10 }
 0x199   :  { %v3206_v17 = vsel %vm1430_vm13, %v2422_v45, %v1429_v12  ;;  %v2410_v45 = vld [vmem:[%s3382_s9] ss:$0 sm:$0xff] }
 0x19a   :  { %v2192_v12 = vld [vmem:[%s3383_s29 + $0x60] sm:$0xf] }
 0x1e1   :  { %v1421_v16 = vpop.xlane.xlu1 %1420 }
 0x1e2   :  { %v1432_v20 = vmul.f32 %v3206_v17, %v1421_v16  ;;  %v2334_v16 = vld [vmem:[%s3383_s29 + $0x6c] sm:$0xf0] }
 0x1e4   :  { %v3210_v46 = vsub.f32 %v3191_v48, %v1432_v20  ;;  %v2332_v20 = vld [vmem:[%s3383_s29 + $0x64] sm:$0xf] }
 0x1e6   :  { %v1436_v55 = vmul.f32 %v3210_v46, %v3210_v46 }
 0x1e8   :  { %v1438_v4 = vsel %vm1160_vm14, %v1436_v55, 0.0 }
 0x1e9   :  { %1439 = vadd.xlane.f32.xlu2 %v1438_v4  ;;  %v1424_v34 = vpop.xlane.xlu1 %1423  ;;  %v2193_v4 = vor.u32 %v2334_v16, %v2192_v12 }
 0x1ea   :  { %v1433_v33 = vmul.f32 %v3206_v17, %v1424_v34  ;;  %v2194_v34 = vld [vmem:[%s3383_s29 + $0x70] sm:$0xf0] }
 0x1eb   :  { %1367 = vmatpush.bf16.msrb.mxu3 %v2193_v4 }
 0x1ec   :  { %v3217_v8 = vsub.f32 %v3195_v3, %v1433_v33  ;;  %v2200_v33 = vld [vmem:[%s3383_s29 + $0x68] sm:$0xf] }
 0x1ee   :  { %v1437_v18 = vmul.f32 %v3217_v8, %v3217_v8 }
 0x1f0   :  { %v1441_v28 = vsel %vm1160_vm14, %v1437_v18, 0.0  ;;  %v2335_v18 = vld [vmem:[%s3383_s29 + $0x74] sm:$0xf0] }
 0x1f1   :  { %1442 = vadd.xlane.f32.xlu2 %v1441_v28  ;;  %v2197_v28 = vor.u32 %v2332_v20, %v2194_v34 }
 0x1f3   :  { %1381 = vmatpush.bf16.msra.mxu0 %v2197_v28 }
 0x207   :  { %v1206_v26 = vpop.f32.mrf.mxu0 }
 0x208   :  { %v1207_v10 = vadd.f32 %v2410_v45, %v1206_v26  ;;  %v2321_v26 = vld [vmem:[%s3383_s29 + $0xc] sm:$0xf] }
 0x20e   :  { %v1010_v23 = vpop.f32.mrf.mxu1 }
 0x214   :  { %v1072_v11 = vpop.f32.mrf.mxu2 }
 0x215   :  { %v1073_v49 = vadd.f32 %v1072_v11, %v1010_v23  ;;  %v2333_v11 = vld [vmem:[%s3383_s29 + $0x6c] sm:$0xf] }
 0x216   :  { %v1012_v52 = vpop.f32.mrf.mxu1 }
 0x217   :  { %v1081_v50 = vadd.f32 %v2409_v47, %v1073_v49  ;;  %v2205_v49 = vor.u32 %v2333_v11, %v2202_v32 }
 0x219   :  { %v2116_v51 = vmul.f32 -1.442695, %v1081_v50  ;;  %1409 = vmatpush.bf16.msrb.mxu2 %v2205_v49 }
 0x21b   :  { %2423 = vpow2.f32 %v2116_v51  ;;  %v2330_v51 = vld [vmem:[%s3383_s29 + $0x4c] sm:$0xf0] }
 0x21c   :  { %v1074_v29 = vpop.f32.mrf.mxu2 }
 0x21d   :  { %v1075_v56 = vadd.f32 %v1074_v29, %v1012_v52  ;;  %v2328_v52 = vld [vmem:[%s3383_s29 + $0x44] sm:$0xf]  ;;  %v2177_v29 = vor.u32 %v2330_v51, %v2176_v25 }
 0x21e   :  { %v2181_v59 = vor.u32 %v2328_v52, %v2178_v53 }
 0x21f   :  { %v1082_v61 = vadd.f32 %v2409_v47, %v1075_v56  ;;  %v2201_v47 = vor.u32 %v2335_v18, %v2200_v33  ;;  %v2184_v56 = vld [vmem:[%s3383_s29 + $0x48] sm:$0xf]  ;;  %1368 = vmatpush.bf16.msrb.mxu3 %v2177_v29 }
 0x220   :  { %v2185_v60 = vor.u32 %v2331_v36, %v2184_v56  ;;  %1382 = vmatpush.bf16.msra.mxu0 %v2181_v59 }
 0x221   :  { %v2424_v63 = vpop.eup %2423  ;;  %v2117_v30 = vmul.f32 -1.442695, %v1082_v61  ;;  %1395 = vmatpush.bf16.msrb.mxu1 %v2201_v47 }
 0x222   :  { %v1089_v44 = vadd.f32 1.0, %v2424_v63  ;;  %v1208_v63 = vpop.f32.mrf.mxu0 }
 0x223   :  { %2425 = vpow2.f32 %v2117_v30 }
 0x224   :  { %2427 = vrcp.f32 %v1089_v44  ;;  %v1102_v21 = vand.u32 2147483648, %v1089_v44  ;;  %vm1096_vm1 = vweird.f32 %v1089_v44  ;;  %v1100_v22 = vand.u32 2147483647, %v1089_v44 }
 0x225   :  { %1396 = vmatpush.bf16.msrb.mxu1 %v2185_v60 }
 0x226   :  { %v1103_v35 = vor.u32 1.1754944e-38, %v1102_v21  ;;  %vm1101_vm4 = vcmp.eq.f32.partialorder %v1100_v22, 8.507059e+37 }
 0x229   :  { %v2426_v1 = vpop.eup %2425 }
 0x22a   :  { %v2428_v31 = vpop.eup %2427  ;;  %v1090_v58 = vadd.f32 1.0, %v2426_v1  ;;  %v2326_v1 = vld [vmem:[%s3383_s29 + $0x2c] sm:$0xf0] }
 0x22b   :  { %v1092_v2 = vmul.f32 %v2428_v31, %v1089_v44  ;;  %vm1097_vm0 = vweird.f32 %v2428_v31  ;;  %v2160_v44 = vld [vmem:[%s3383_s29 + $0x20] sm:$0xf] }
 0x22c   :  { %2429 = vrcp.f32 %v1090_v58  ;;  %vm1098_vm2 = vmor %vm1096_vm1, %vm1097_vm0  ;;  %v1117_v5 = vand.u32 2147483648, %v1090_v58  ;;  %v1115_v27 = vand.u32 2147483647, %v1090_v58  ;;  %vm1111_vm5 = vweird.f32 %v1090_v58 }
 0x22d   :  { %v1093_v6 = vsub.f32 1.0, %v1092_v2  ;;  %v2161_v2 = vor.u32 %v2326_v1, %v2160_v44 }
 0x22e   :  { %v1118_v39 = vor.u32 1.1754944e-38, %v1117_v5  ;;  %vm1116_vm7 = vcmp.eq.f32.partialorder %v1115_v27, 8.507059e+37  ;;  %v2170_v5 = vld [vmem:[%s3383_s29 + $0x38] sm:$0xf0]  ;;  %v2144_v27 = vld [vmem:[%s3383_s29] sm:$0xf] }
 0x22f   :  { %v1094_v7 = vmul.f32 %v2428_v31, %v1093_v6  ;;  %v2162_v6 = vld [vmem:[%s3383_s29 + $0x30] sm:$0xf0]  ;;  %1369 = vmatpush.bf16.msrb.mxu3 %v2161_v2 }
 0x231   :  { %v1095_v14 = vadd.f32 %v2428_v31, %v1094_v7  ;;  %v2168_v7 = vld [vmem:[%s3383_s29 + $0x28] sm:$0xf] }
 0x232   :  { %v2430_v9 = vpop.eup %2429 }
 0x233   :  { %v1107_v19 = vmul.f32 %v2430_v9, %v1090_v58  ;;  %v1099_v24 = vsel %vm1098_vm2, %v2428_v31, %v1095_v14  ;;  %vm1112_vm3 = vweird.f32 %v2430_v9  ;;  %v2324_v31 = vld [vmem:[%s3383_s29 + $0x24] sm:$0xf]  ;;  %v1209_v14 = vadd.f32 %v2410_v45, %v1208_v63  ;;  %v3270_v63 = vld [vmem:[%s3384_s3] sm:$0xf] }
 0x234   :  { %v1104_v13 = vsel %vm1101_vm4, %v1103_v35, %v1099_v24  ;;  %vm1113_vm6 = vmor %vm1111_vm5, %vm1112_vm3  ;;  %v2165_v21 = vor.u32 %v2324_v31, %v2162_v6  ;;  %v2322_v35 = vld [vmem:[%s3383_s29 + $0xc] sm:$0xf0]  ;;  %v1273_v44 = vperm.slane %v3270_v63, 1 }
 0x235   :  { %v1108_v57 = vsub.f32 1.0, %v1107_v19  ;;  %v1121_v42 = vmul.f32 %v1104_v13, %v1081_v50  ;;  %v2145_v13 = vor.u32 %v2322_v35, %v2144_v27 }
 0x236   :  { %1383 = vmatpush.bf16.msra.mxu0 %v2165_v21 }
 0x237   :  { %v1109_v37 = vmul.f32 %v2430_v9, %v1108_v57  ;;  %v2325_v57 = vld [vmem:[%s3383_s29 + $0x2c] sm:$0xf]  ;;  %1370 = vmatpush.bf16.msrb.mxu3 %v2145_v13 }
 0x238   :  { %v2173_v24 = vor.u32 %v2325_v57, %v2170_v5 }
 0x239   :  { %v1110_v38 = vadd.f32 %v2430_v9, %v1109_v37 }
 0x23b   :  { %v1114_v0 = vsel %vm1113_vm6, %v2430_v9, %v1110_v38  ;;  %v2327_v9 = vld [vmem:[%s3383_s29 + $0x34] sm:$0xf0]  ;;  %v2320_v38 = vld [vmem:[%s3383_s29 + $0x4] sm:$0xf] }
 0x23c   :  { %v1119_v40 = vsel %vm1116_vm7, %v1118_v39, %v1114_v0  ;;  %v2169_v22 = vor.u32 %v2327_v9, %v2168_v7  ;;  %v2146_v39 = vld [vmem:[%s3383_s29 + $0x10] sm:$0xf0]  ;;  %v2152_v0 = vld [vmem:[%s3383_s29 + $0x8] sm:$0xf] }
 0x23d   :  { %v1122_v43 = vmul.f32 %v1119_v40, %v1082_v61  ;;  %v2329_v61 = vld [vmem:[%s3383_s29 + $0x4c] sm:$0xf]  ;;  %v2323_v40 = vld [vmem:[%s3383_s29 + $0x14] sm:$0xf0] }
 0x23e   :  { %v2189_v30 = vor.u32 %v2329_v61, %v2186_v62  ;;  %1397 = vmatpush.bf16.msrb.mxu1 %v2169_v22  ;;  %v2153_v45 = vor.u32 %v2323_v40, %v2152_v0 }
 0x23f   :  { %v1131_v54 = vpack.c.bf16 %v1122_v43, %v1121_v42 }
 0x240   :  { %1410 = vmatpush.bf16.msrb.mxu2 %v2189_v30  ;;  %v2339_v30 = vld [vmem:[%s3385_s14 + $0x18] sm:$0xff] }
 0x241   :  { %2134 = vmatmul.msk.bf16.vlgmr.msra.gmra.mxu3 %vm1160_vm14, %v1131_v54  ;;  %v2149_v54 = vor.u32 %v2320_v38, %v2146_v39  ;;  %v2338_v38 = vld [vmem:[%s3385_s14 + $0x10] sm:$0xff]  ;;  %v2337_v39 = vld [vmem:[%s3385_s14 + $0x8] sm:$0xff] }
 0x242   :  { %1398 = vmatpush.bf16.msrb.mxu1 %v2153_v45  ;;  %1540 = vmatpush.bf16.msra.mxu3 %v2339_v30  ;;  %v2340_v30 = vld [vmem:[#allocation12] sm:$0xff] }
 0x243   :  { %1384 = vmatpush.bf16.msra.mxu0 %v2149_v54  ;;  %v2336_v54 = vld [vmem:[%s3385_s14] sm:$0xff] }
 0x244   :  { %1411 = vmatpush.bf16.msrb.mxu2 %v2173_v24 }
 0x246   :  { %1541 = vmatpush.bf16.msra.mxu3 %v2338_v38 }
 0x24a   :  { %1542 = vmatpush.bf16.msra.mxu3 %v2337_v39 }
 0x24e   :  { %1543 = vmatpush.bf16.msra.mxu3 %v2336_v54 }
 0x25c   :  { %v1440_v22 = vpop.xlane.xlu2 %1439 }
 0x25d   :  { %v1444_v5 = vmul.f32 %v1440_v22, %v3206_v17 }
 0x264   :  { %v1443_v57 = vpop.xlane.xlu2 %1442 }
 0x265   :  { %v1445_v24 = vmul.f32 %v1443_v57, %v3206_v17 }
 0x267   :  { %v1447_v27 = vadd.f32 1e-06, %v1445_v24 }
 0x269   :  { %vm1464_vm3 = vweird.f32 %v1447_v27 }
 0x2c4   :  { %v1173_v55 = vpop.f32.mrf.mxu3 }
 0x2c5   :  { %v1174_v23 = vadd.f32 %v2411_v15, %v1173_v55 }
 0x2c7   :  { %v3237_v50 = vadd.f32 %v1207_v10, %v1174_v23 }
 0x2c9   :  { %v2140_v41 = vmul.f32 -1.442695, %v3237_v50 }
 0x2cb   :  { %2431 = vpow2.f32 %v2140_v41 }
 0x2cc   :  { %v1175_v58 = vpop.f32.mrf.mxu3 }
 0x2cd   :  { %v1176_v19 = vadd.f32 %v2411_v15, %v1175_v58  ;;  %v2154_v15 = vld [vmem:[%s3383_s29 + $0x18] sm:$0xf0] }
 0x2ce   :  { %v2157_v12 = vor.u32 %v2321_v26, %v2154_v15 }
 0x2cf   :  { %v1212_v37 = vadd.f32 %v1209_v14, %v1176_v19 }
 0x2d0   :  { %1412 = vmatpush.bf16.msrb.mxu2 %v2157_v12 }
 0x2d1   :  { %v2432_v42 = vpop.eup %2431  ;;  %v2141_v43 = vmul.f32 -1.442695, %v1212_v37 }
 0x2d2   :  { %v1219_v10 = vadd.f32 1.0, %v2432_v42 }
 0x2d3   :  { %2433 = vpow2.f32 %v2141_v43 }
 0x2d4   :  { %2435 = vrcp.f32 %v1219_v10  ;;  %v1232_v47 = vand.u32 2147483648, %v1219_v10  ;;  %vm1226_vm9 = vweird.f32 %v1219_v10  ;;  %v1230_v11 = vand.u32 2147483647, %v1219_v10 }
 0x2d6   :  { %v1233_v29 = vor.u32 1.1754944e-38, %v1232_v47  ;;  %vm1231_vm12 = vcmp.eq.f32.partialorder %v1230_v11, 8.507059e+37 }
 0x2d9   :  { %v2434_v16 = vpop.eup %2433 }
 0x2da   :  { %v2436_v20 = vpop.eup %2435  ;;  %v1220_v55 = vadd.f32 1.0, %v2434_v16 }
 0x2db   :  { %v1222_v4 = vmul.f32 %v2436_v20, %v1219_v10  ;;  %vm1227_vm8 = vweird.f32 %v2436_v20 }
 0x2dc   :  { %2437 = vrcp.f32 %v1220_v55  ;;  %vm1228_vm10 = vmor %vm1226_vm9, %vm1227_vm8  ;;  %v1247_v49 = vand.u32 2147483648, %v1220_v55  ;;  %v1245_v52 = vand.u32 2147483647, %v1220_v55  ;;  %vm1241_vm13 = vweird.f32 %v1220_v55 }
 0x2dd   :  { %v1223_v34 = vsub.f32 1.0, %v1222_v4  ;;  %v2412_v4 = vld [vmem:[%s3386_s4] ss:$0 sm:$0xff] }
 0x2de   :  { %v1248_v36 = vor.u32 1.1754944e-38, %v1247_v49  ;;  %vm1246_vm0 = vcmp.eq.f32.partialorder %v1245_v52, 8.507059e+37 }
 0x2df   :  { %v1224_v33 = vmul.f32 %v2436_v20, %v1223_v34 }
 0x2e1   :  { %v1225_v23 = vadd.f32 %v2436_v20, %v1224_v33 }
 0x2e2   :  { %v2438_v18 = vpop.eup %2437 }
 0x2e3   :  { %v1237_v28 = vmul.f32 %v2438_v18, %v1220_v55  ;;  %v1229_v25 = vsel %vm1228_vm10, %v2436_v20, %v1225_v23  ;;  %vm1242_vm11 = vweird.f32 %v2438_v18 }
 0x2e4   :  { %v1234_v56 = vsel %vm1231_vm12, %v1233_v29, %v1229_v25  ;;  %vm1243_vm15 = vmor %vm1241_vm13, %vm1242_vm11 }
 0x2e5   :  { %v1238_v32 = vsub.f32 1.0, %v1237_v28  ;;  %v1251_v60 = vmul.f32 %v1234_v56, %v3237_v50  ;;  %v1272_v50 = vperm.slane %v3270_v63, 0  ;;  %v2414_v56 = vld [vmem:[%s3388_s13] ss:$0 sm:$0xff] }
 0x2e7   :  { %v1239_v51 = vmul.f32 %v2438_v18, %v1238_v32 }
 0x2e9   :  { %v1240_v53 = vadd.f32 %v2438_v18, %v1239_v51 }
 0x2eb   :  { %v1244_v41 = vsel %vm1243_vm15, %v2438_v18, %v1240_v53  ;;  %v2413_v18 = vld [vmem:[%s3387_s28] ss:$0 sm:$0xff] }
 0x2ec   :  { %v1249_v59 = vsel %vm1246_vm0, %v1248_v36, %v1244_v41  ;;  %v2343_v36 = vld [vmem:[#allocation12 + $0x18] sm:$0xff] }
 0x2ed   :  { %v1252_v61 = vmul.f32 %v1249_v59, %v1212_v37  ;;  %v1446_v37 = vadd.f32 1e-06, %v1444_v5  ;;  %1634 = vmatpush.bf16.msrb.mxu0 %v2343_v36  ;;  %v2346_v36 = vld [vmem:[#allocation13 + $0x10] sm:$0xff] }
 0x2ef   :  { %v1269_v62 = vpack.c.bf16 %v1252_v61, %v1251_v60  ;;  %2439 = vrsqrt.f32 %v1446_v37  ;;  %vm1454_vm1 = vweird.f32 %v1446_v37  ;;  %v2341_v60 = vld [vmem:[#allocation12 + $0x8] sm:$0xff] }
 0x2f0   :  { %2441 = vrsqrt.f32 %v1447_v27 }
 0x2f1   :  { %2206 = vmatmul.msk.bf16.vlgmr.msrb.gmra.mxu3 %vm1160_vm14, %v1269_v62  ;;  %2207 = vmatmul.msk.bf16.vlgmr.msra.gmra.mxu0 %vm1160_vm14, %v1269_v62 }
 0x2f2   :  { %2208 = vmatmul.msk.bf16.vlgmr.msrb.gmra.mxu1 %vm1160_vm14, %v1269_v62  ;;  %2209 = vmatmul.msk.bf16.vlgmr.msrb.gmra.mxu2 %vm1160_vm14, %v1269_v62 }
 0x2f5   :  { %v2440_v35 = vpop.eup %2439 }
 0x2f6   :  { %v2442_v13 = vpop.eup %2441  ;;  %v1449_v0 = vmul.f32 %v2440_v35, %v1446_v37  ;;  %vm1455_vm2 = vweird.f32 %v2440_v35 }
 0x2f7   :  { %v1459_v40 = vmul.f32 %v2442_v13, %v1447_v27  ;;  %vm1465_vm4 = vweird.f32 %v2442_v13  ;;  %vm1456_vm5 = vmor %vm1454_vm1, %vm1455_vm2 }
 0x2f8   :  { %v1450_v42 = vmul.f32 %v2440_v35, %v1449_v0  ;;  %vm1466_vm6 = vmor %vm1464_vm3, %vm1465_vm4 }
 0x2f9   :  { %v1460_v43 = vmul.f32 %v2442_v13, %v1459_v40 }
 0x2fa   :  { %v1451_v45 = vmul.f32 0.5, %v1450_v42 }
 0x2fb   :  { %v1461_v26 = vmul.f32 0.5, %v1460_v43 }
 0x2fc   :  { %v1452_v15 = vsub.f32 1.5, %v1451_v45 }
 0x2fd   :  { %v1462_v10 = vsub.f32 1.5, %v1461_v26 }
 0x2fe   :  { %v1453_v12 = vmul.f32 %v2440_v35, %v1452_v15 }
 0x2ff   :  { %v1463_v16 = vmul.f32 %v2442_v13, %v1462_v10  ;;  %v2415_v10 = vld [vmem:[%s3389_s23] ss:$0 sm:$0xff] }
 0x300   :  { %v1457_v20 = vsel %vm1456_vm5, %v2440_v35, %v1453_v12 }
 0x301   :  { %v1467_v55 = vsel %vm1466_vm6, %v2442_v13, %v1463_v16  ;;  %v1468_v34 = vmul.f32 %v1457_v20, %v3210_v46 }
 0x302   :  { %v1469_v33 = vmul.f32 %v1467_v55, %v3217_v8  ;;  %v2342_v8 = vld [vmem:[#allocation12 + $0x10] sm:$0xff] }
 0x303   :  { %v1474_v23 = vmul.f32 %v2412_v4, %v1468_v34  ;;  %1635 = vmatpush.bf16.msrb.mxu0 %v2342_v8 }
 0x304   :  { %v1475_v28 = vmul.f32 %v2412_v4, %v1469_v33 }
 0x305   :  { %v1480_v11 = vadd.f32 %v2413_v18, %v1474_v23 }
 0x306   :  { %v1481_v49 = vadd.f32 %v2413_v18, %v1475_v28 }
 0x307   :  { %1636 = vmatpush.bf16.msrb.mxu0 %v2341_v60  ;;  %v2344_v60 = vld [vmem:[#allocation13] sm:$0xff] }
 0x30b   :  { %1637 = vmatpush.bf16.msrb.mxu0 %v2340_v30 }
 0x36e   :  { %v1386_v1 = vpop.f32.mrf.mxu0 }
 0x36f   :  { %v3274_v31 = vadd.f32 %v1386_v1, %v1273_v44 }
 0x374   :  { %v1372_v58 = vpop.f32.mrf.mxu3 }
 0x375   :  { %v1373_v2 = vadd.f32 %v1372_v58, %v1272_v50 }
 0x376   :  { %v1388_v19 = vpop.f32.mrf.mxu0 }
 0x377   :  { %v1482_v6 = vadd.f32 1.0, %v1373_v2  ;;  %v3279_v21 = vadd.f32 %v1388_v19, %v1273_v44 }
 0x379   :  { %1486 = vrot.lane.b32.xlu0 %v1482_v6, %s2726_s26 }
 0x37c   :  { %v1374_v7 = vpop.f32.mrf.mxu3 }
 0x37d   :  { %v1375_v9 = vadd.f32 %v1374_v7, %v1272_v50 }
 0x37f   :  { %v1483_v14 = vadd.f32 1.0, %v1375_v9 }
 0x381   :  { %1488 = vrot.lane.b32.xlu1 %v1483_v14, %s2726_s26 }
 0x389   :  { %1712 = vrot.lane.b32.xlu1 %v3279_v21, %s2726_s26 }
 0x3eb   :  { %v1487_v47 = vpop.permute.xlu0 %1486 }
 0x3ec   :  { %v1492_v32 = vmul.f32 %v1487_v47, %v1480_v11 }
 0x3ee   :  { %v1494_v52 = vadd.f32 %v1492_v32, %v1373_v2 }
 0x3f3   :  { %v1489_v25 = vpop.permute.xlu1 %1488 }
 0x3f4   :  { %v1493_v51 = vmul.f32 %v1489_v25, %v1481_v49 }
 0x3f6   :  { %v1495_v29 = vadd.f32 %v1493_v51, %v1375_v9 }
 0x3f8   :  { %v1504_v53 = vpack.c.bf16 %v1495_v29, %v1494_v52  ;;  %v2347_v29 = vld [vmem:[#allocation13 + $0x18] sm:$0xff] }
 0x3f9   :  { %1762 = vmatpush.bf16.msra.mxu1 %v2347_v29 }
 0x3fa   :  { %2226 = vmatmul.msk.bf16.vlgmr.msra.gmra.mxu3 %vm1160_vm14, %v1504_v53 }
 0x3fd   :  { %1763 = vmatpush.bf16.msra.mxu1 %v2346_v36 }
 0x47d   :  { %v1545_v41 = vpop.f32.mrf.mxu3 }
 0x47e   :  { %v1546_v46 = vadd.f32 %v2414_v56, %v1545_v41 }
 0x480   :  { %v2227_v59 = vmul.f32 -1.442695, %v1546_v46 }
 0x482   :  { %2443 = vpow2.f32 %v2227_v59 }
 0x485   :  { %v1547_v61 = vpop.f32.mrf.mxu3 }
 0x486   :  { %v1548_v62 = vadd.f32 %v2414_v56, %v1547_v61 }
 0x488   :  { %v2444_v44 = vpop.eup %2443  ;;  %v2228_v1 = vmul.f32 -1.442695, %v1548_v62 }
 0x489   :  { %v1556_v50 = vadd.f32 1.0, %v2444_v44 }
 0x48a   :  { %2445 = vpow2.f32 %v2228_v1  ;;  %v1400_v1 = vpop.f32.mrf.mxu1 }
 0x48b   :  { %2447 = vrcp.f32 %v1556_v50  ;;  %v1569_v5 = vand.u32 2147483648, %v1556_v50  ;;  %vm1563_vm8 = vweird.f32 %v1556_v50  ;;  %v1567_v24 = vand.u32 2147483647, %v1556_v50 }
 0x48d   :  { %v1570_v39 = vor.u32 1.1754944e-38, %v1569_v5  ;;  %vm1568_vm11 = vcmp.eq.f32.partialorder %v1567_v24, 8.507059e+37 }
 0x490   :  { %v2446_v58 = vpop.eup %2445 }
 0x491   :  { %v2448_v2 = vpop.eup %2447  ;;  %v1557_v6 = vadd.f32 1.0, %v2446_v58 }
 0x492   :  { %v1559_v7 = vmul.f32 %v2448_v2, %v1556_v50  ;;  %vm1564_vm7 = vweird.f32 %v2448_v2 }
 0x493   :  { %2449 = vrcp.f32 %v1557_v6  ;;  %vm1565_vm9 = vmor %vm1563_vm8, %vm1564_vm7  ;;  %v1584_v27 = vand.u32 2147483648, %v1557_v6  ;;  %v1582_v13 = vand.u32 2147483647, %v1557_v6  ;;  %vm1578_vm12 = vweird.f32 %v1557_v6 }
 0x494   :  { %v1560_v9 = vsub.f32 1.0, %v1559_v7 }
 0x495   :  { %v1585_v42 = vor.u32 1.1754944e-38, %v1584_v27  ;;  %vm1583_vm15 = vcmp.eq.f32.partialorder %v1582_v13, 8.507059e+37  ;;  %v1402_v27 = vpop.f32.mrf.mxu1 }
 0x496   :  { %v1561_v14 = vmul.f32 %v2448_v2, %v1560_v9 }
 0x498   :  { %v1562_v22 = vadd.f32 %v2448_v2, %v1561_v14 }
 0x499   :  { %v2450_v19 = vpop.eup %2449 }
 0x49a   :  { %v1574_v57 = vmul.f32 %v2450_v19, %v1557_v6  ;;  %v1566_v35 = vsel %vm1565_vm9, %v2448_v2, %v1562_v22  ;;  %vm1579_vm10 = vweird.f32 %v2450_v19 }
 0x49b   :  { %v1571_v40 = vsel %vm1568_vm11, %v1570_v39, %v1566_v35  ;;  %vm1580_vm13 = vmor %vm1578_vm12, %vm1579_vm10 }
 0x49c   :  { %v1575_v37 = vsub.f32 1.0, %v1574_v57  ;;  %v1588_v45 = vmul.f32 %v1571_v40, %v1546_v46  ;;  %v2345_v46 = vld [vmem:[#allocation13 + $0x8] sm:$0xff]  ;;  %v1274_v57 = vperm.slane %v3270_v63, 2 }
 0x49d   :  { %1764 = vmatpush.bf16.msra.mxu1 %v2345_v46 }
 0x49e   :  { %v1576_v38 = vmul.f32 %v2450_v19, %v1575_v37  ;;  %v2417_v37 = vld [vmem:[%s3391_s19] ss:$0 sm:$0xff]  ;;  %v3323_v39 = vadd.f32 %v1402_v27, %v1274_v57 }
 0x4a0   :  { %v1577_v0 = vadd.f32 %v2450_v19, %v1576_v38  ;;  %v3321_v38 = vadd.f32 %v1400_v1, %v1274_v57  ;;  %v1414_v57 = vpop.f32.mrf.mxu2 }
 0x4a1   :  { %1765 = vmatpush.bf16.msra.mxu1 %v2344_v60 }
 0x4a2   :  { %v1581_v43 = vsel %vm1580_vm13, %v2450_v19, %v1577_v0  ;;  %v2416_v19 = vld [vmem:[%s3390_s0] ss:$0 sm:$0xff] }
 0x4a3   :  { %v1586_v54 = vsel %vm1583_vm15, %v1585_v42, %v1581_v43  ;;  %v1704_v42 = vadd.f32 1.0, %v3321_v38 }
 0x4a4   :  { %v1589_v26 = vmul.f32 %v1586_v54, %v1548_v62  ;;  %v1705_v54 = vadd.f32 1.0, %v3323_v39 }
 0x4a6   :  { %v1598_v15 = vpack.c.bf16 %v1589_v26, %v1588_v45 }
 0x4a8   :  { %2245 = vmatmul.msk.bf16.vlgmr.msrb.gmra.mxu0 %vm1160_vm14, %v1598_v15 }
 0x525   :  { %v1639_v12 = vpop.f32.mrf.mxu0 }
 0x526   :  { %v1640_v16 = vadd.f32 %v2415_v10, %v1639_v12 }
 0x528   :  { %v1644_v20 = vmul.f32 %v1640_v16, %v3274_v31 }
 0x52a   :  { %v3298_v55 = vadd.f32 %v1644_v20, %v3191_v48 }
 0x52c   :  { %v1648_v4 = vsel %vm1160_vm14, %v3298_v55, 0.0 }
 0x52d   :  { %v1641_v34 = vpop.f32.mrf.mxu0  ;;  %1649 = vadd.xlane.f32.xlu2 %v1648_v4 }
 0x52e   :  { %v1642_v33 = vadd.f32 %v2415_v10, %v1641_v34  ;;  %v1713_v10 = vpop.permute.xlu1 %1712  ;;  %v2418_v34 = vld [vmem:[%s3392_s1] ss:$0 sm:$0xff] }
 0x530   :  { %v1645_v18 = vmul.f32 %v1642_v33, %v3279_v21  ;;  %v2351_v33 = vld [vmem:[#allocation15 + $0x18] sm:$0xff] }
 0x531   :  { %1856 = vmatpush.bf16.msra.mxu2 %v2351_v33 }
 0x532   :  { %v3304_v23 = vadd.f32 %v1645_v18, %v3195_v3 }
 0x534   :  { %v1651_v28 = vsel %vm1160_vm14, %v3304_v23, 0.0 }
 0x535   :  { %1652 = vadd.xlane.f32.xlu0 %v1651_v28 }
 0x5a0   :  { %v1650_v47 = vpop.xlane.xlu2 %1649 }
 0x5a1   :  { %v1654_v11 = vmul.f32 %v1650_v47, %v3206_v17  ;;  %v2350_v47 = vld [vmem:[#allocation15 + $0x10] sm:$0xff] }
 0x5a2   :  { %1857 = vmatpush.bf16.msra.mxu2 %v2350_v47 }
 0x5a3   :  { %v1656_v48 = vsub.f32 %v3298_v55, %v1654_v11 }
 0x5a5   :  { %v1658_v32 = vmul.f32 %v1656_v48, %v1656_v48 }
 0x5a7   :  { %v1660_v49 = vsel %vm1160_vm14, %v1658_v32, 0.0 }
 0x5a8   :  { %v1653_v25 = vpop.xlane.xlu0 %1652  ;;  %1661 = vadd.xlane.f32.xlu2 %v1660_v49 }
 0x5a9   :  { %v1655_v51 = vmul.f32 %v1653_v25, %v3206_v17  ;;  %v2348_v25 = vld [vmem:[#allocation15] sm:$0xff] }
 0x5ab   :  { %v1657_v21 = vsub.f32 %v3304_v23, %v1655_v51 }
 0x5ad   :  { %v1659_v3 = vmul.f32 %v1657_v21, %v1657_v21 }
 0x5af   :  { %v1663_v52 = vsel %vm1160_vm14, %v1659_v3, 0.0 }
 0x5b0   :  { %1664 = vadd.xlane.f32.xlu2 %v1663_v52 }
 0x5c8   :  { %1710 = vrot.lane.b32.xlu2 %v3274_v31, %s2726_s26 }
 0x61b   :  { %v1662_v53 = vpop.xlane.xlu2 %1661 }
 0x61c   :  { %v1666_v56 = vmul.f32 %v1662_v53, %v3206_v17 }
 0x61e   :  { %v1668_v41 = vadd.f32 1e-06, %v1666_v56 }
 0x620   :  { %2451 = vrsqrt.f32 %v1668_v41  ;;  %vm1676_vm1 = vweird.f32 %v1668_v41 }
 0x623   :  { %v1665_v8 = vpop.xlane.xlu2 %1664 }
 0x624   :  { %v1667_v59 = vmul.f32 %v1665_v8, %v3206_v17 }
 0x626   :  { %v2452_v61 = vpop.eup %2451  ;;  %v1669_v62 = vadd.f32 1e-06, %v1667_v59 }
 0x627   :  { %v1671_v30 = vmul.f32 %v2452_v61, %v1668_v41  ;;  %vm1677_vm0 = vweird.f32 %v2452_v61 }
 0x628   :  { %2453 = vrsqrt.f32 %v1669_v62  ;;  %vm1678_vm2 = vmor %vm1676_vm1, %vm1677_vm0  ;;  %vm1686_vm4 = vweird.f32 %v1669_v62 }
 0x629   :  { %v1672_v31 = vmul.f32 %v2452_v61, %v1671_v30 }
 0x62b   :  { %v1673_v44 = vmul.f32 0.5, %v1672_v31  ;;  %v1711_v12 = vpop.permute.xlu2 %1710 }
 0x62d   :  { %v1674_v50 = vsub.f32 1.5, %v1673_v44 }
 0x62e   :  { %v2454_v58 = vpop.eup %2453 }
 0x62f   :  { %v1675_v2 = vmul.f32 %v2452_v61, %v1674_v50  ;;  %v1681_v6 = vmul.f32 %v2454_v58, %v1669_v62  ;;  %vm1687_vm3 = vweird.f32 %v2454_v58 }
 0x630   :  { %vm1688_vm5 = vmor %vm1686_vm4, %vm1687_vm3 }
 0x631   :  { %v1679_v7 = vsel %vm1678_vm2, %v2452_v61, %v1675_v2  ;;  %v1682_v9 = vmul.f32 %v2454_v58, %v1681_v6 }
 0x632   :  { %v1690_v14 = vmul.f32 %v1679_v7, %v1656_v48  ;;  %v2349_v48 = vld [vmem:[#allocation15 + $0x8] sm:$0xff] }
 0x633   :  { %v1683_v22 = vmul.f32 0.5, %v1682_v9  ;;  %1858 = vmatpush.bf16.msra.mxu2 %v2349_v48 }
 0x634   :  { %v1696_v24 = vmul.f32 %v2416_v19, %v1690_v14 }
 0x635   :  { %v1684_v5 = vsub.f32 1.5, %v1683_v22 }
 0x636   :  { %v1702_v40 = vadd.f32 %v2417_v37, %v1696_v24  ;;  %v2419_v24 = vld [vmem:[%s2881_s12] ss:$0 sm:$0xff] }
 0x637   :  { %v1685_v35 = vmul.f32 %v2454_v58, %v1684_v5  ;;  %1859 = vmatpush.bf16.msra.mxu2 %v2348_v25  ;;  %v1416_v5 = vpop.f32.mrf.mxu2 }
 0x638   :  { %v1706_v26 = vmul.f32 %v1704_v42, %v1702_v40 }
 0x639   :  { %v1689_v13 = vsel %vm1688_vm5, %v2454_v58, %v1685_v35  ;;  %vm1998_vm5 = vcmask 64512  }
 0x63a   :  { %v1691_v0 = vmul.f32 %v1689_v13, %v1657_v21  ;;  %v1716_v16 = vadd.f32 %v1711_v12, %v1706_v26 }
 0x63c   :  { %v1697_v43 = vmul.f32 %v2416_v19, %v1691_v0 }
 0x63e   :  { %v1703_v45 = vadd.f32 %v2417_v37, %v1697_v43 }
 0x640   :  { %v1707_v15 = vmul.f32 %v1705_v54, %v1703_v45 }
 0x642   :  { %v1717_v20 = vadd.f32 %v1713_v10, %v1707_v15  ;;  %v1275_v15 = vperm.slane %v3270_v63, 3 }
 0x644   :  { %v1726_v4 = vpack.c.bf16 %v1717_v20, %v1716_v16  ;;  %v3340_v10 = vadd.f32 %v1414_v57, %v1275_v15 }
 0x646   :  { %2262 = vmatmul.msk.bf16.vlgmr.msra.gmra.mxu1 %vm1160_vm14, %v1726_v4  ;;  %v1930_v12 = vadd.f32 1.0, %v3340_v10 }
 0x6c3   :  { %v1767_v18 = vpop.f32.mrf.mxu1 }
 0x6c4   :  { %v1768_v28 = vadd.f32 %v2418_v34, %v1767_v18 }
 0x6c6   :  { %v2263_v11 = vmul.f32 -1.442695, %v1768_v28 }
 0x6c8   :  { %2455 = vpow2.f32 %v2263_v11  ;;  %v1417_v11 = vadd.f32 %v1416_v5, %v1275_v15  ;;  %v2420_v5 = vld [vmem:[%s2891_s27] ss:$0 sm:$0xff] }
 0x6ca   :  { %v1931_v48 = vadd.f32 1.0, %v1417_v11 }
 0x6cb   :  { %v1769_v32 = vpop.f32.mrf.mxu1 }
 0x6cc   :  { %v1770_v49 = vadd.f32 %v2418_v34, %v1769_v32 }
 0x6ce   :  { %v2456_v51 = vpop.eup %2455  ;;  %v2264_v21 = vmul.f32 -1.442695, %v1770_v49 }
 0x6cf   :  { %v1778_v3 = vadd.f32 1.0, %v2456_v51  ;;  %v2355_v51 = vld [vmem:[%s2886_s30 + $0x18] sm:$0xff] }
 0x6d0   :  { %2457 = vpow2.f32 %v2264_v21  ;;  %1988 = vmatpush.bf16.msrb.mxu3 %v2355_v51  ;;  %v2354_v21 = vld [vmem:[%s2886_s30 + $0x10] sm:$0xff] }
 0x6d1   :  { %2459 = vrcp.f32 %v1778_v3  ;;  %v1791_v60 = vand.u32 2147483648, %v1778_v3  ;;  %vm1785_vm7 = vweird.f32 %v1778_v3  ;;  %v1789_v61 = vand.u32 2147483647, %v1778_v3 }
 0x6d3   :  { %v1792_v50 = vor.u32 1.1754944e-38, %v1791_v60  ;;  %vm1790_vm10 = vcmp.eq.f32.partialorder %v1789_v61, 8.507059e+37 }
 0x6d4   :  { %1989 = vmatpush.bf16.msrb.mxu3 %v2354_v21 }
 0x6d6   :  { %v2458_v52 = vpop.eup %2457 }
 0x6d7   :  { %v2460_v29 = vpop.eup %2459  ;;  %v1779_v53 = vadd.f32 1.0, %v2458_v52 }
 0x6d8   :  { %v1781_v56 = vmul.f32 %v2460_v29, %v1778_v3  ;;  %vm1786_vm6 = vweird.f32 %v2460_v29 }
 0x6d9   :  { %2461 = vrcp.f32 %v1779_v53  ;;  %vm1787_vm8 = vmor %vm1785_vm7, %vm1786_vm6  ;;  %v1806_v30 = vand.u32 2147483648, %v1779_v53  ;;  %v1804_v1 = vand.u32 2147483647, %v1779_v53  ;;  %vm1800_vm11 = vweird.f32 %v1779_v53 }
 0x6da   :  { %v1782_v36 = vsub.f32 1.0, %v1781_v56  ;;  %v2352_v56 = vld [vmem:[%s2886_s30] sm:$0xff] }
 0x6db   :  { %v1807_v6 = vor.u32 1.1754944e-38, %v1806_v30  ;;  %vm1805_vm13 = vcmp.eq.f32.partialorder %v1804_v1, 8.507059e+37 }
 0x6dc   :  { %v1783_v41 = vmul.f32 %v2460_v29, %v1782_v36 }
 0x6de   :  { %v1784_v8 = vadd.f32 %v2460_v29, %v1783_v41 }
 0x6df   :  { %v2462_v46 = vpop.eup %2461 }
 0x6e0   :  { %v1796_v59 = vmul.f32 %v2462_v46, %v1779_v53  ;;  %v1788_v31 = vsel %vm1787_vm8, %v2460_v29, %v1784_v8  ;;  %vm1801_vm9 = vweird.f32 %v2462_v46  ;;  %v2353_v29 = vld [vmem:[%s2886_s30 + $0x8] sm:$0xff] }
 0x6e1   :  { %v1793_v2 = vsel %vm1790_vm10, %v1792_v50, %v1788_v31  ;;  %vm1802_vm12 = vmor %vm1800_vm11, %vm1801_vm9  ;;  %1990 = vmatpush.bf16.msrb.mxu3 %v2353_v29 }
 0x6e2   :  { %v1797_v62 = vsub.f32 1.0, %v1796_v59  ;;  %v1810_v14 = vmul.f32 %v1793_v2, %v1768_v28 }
 0x6e4   :  { %v1798_v44 = vmul.f32 %v2462_v46, %v1797_v62 }
 0x6e5   :  { %1991 = vmatpush.bf16.msrb.mxu3 %v2352_v56 }
 0x6e6   :  { %v1799_v58 = vadd.f32 %v2462_v46, %v1798_v44 }
 0x6e8   :  { %v1803_v7 = vsel %vm1802_vm12, %v2462_v46, %v1799_v58 }
 0x6e9   :  { %v1808_v9 = vsel %vm1805_vm13, %v1807_v6, %v1803_v7 }
 0x6ea   :  { %v1811_v19 = vmul.f32 %v1808_v9, %v1770_v49 }
 0x6ec   :  { %v1820_v22 = vpack.c.bf16 %v1811_v19, %v1810_v14 }
 0x6ee   :  { %2281 = vmatmul.msk.bf16.vlgmr.msra.gmra.mxu2 %vm1160_vm14, %v1820_v22 }
 0x771   :  { %v1861_v37 = vpop.f32.mrf.mxu2 }
 0x772   :  { %v1862_v27 = vadd.f32 %v2419_v24, %v1861_v37 }
 0x774   :  { %1868 = vrot.lane.b32.xlu1 %v1862_v27, %s2726_s26 }
 0x779   :  { %v1863_v35 = vpop.f32.mrf.mxu2 }
 0x77a   :  { %v1864_v13 = vadd.f32 %v2419_v24, %v1863_v35 }
 0x77c   :  { %1870 = vrot.lane.b32.xlu1 %v1864_v13, %s2726_s26 }
 0x7e6   :  { %v1869_v0 = vpop.permute.xlu1 %1868 }
 0x7e7   :  { %v1874_v40 = vmul.f32 %v1869_v0, %v3321_v38 }
 0x7e9   :  { %1878 = vrot.lane.b32.xlu2 %v1874_v40, %s2726_s26 }
 0x7ee   :  { %v1871_v42 = vpop.permute.xlu1 %1870 }
 0x7ef   :  { %v1875_v43 = vmul.f32 %v1871_v42, %v3323_v39 }
 0x7f1   :  { %1880 = vrot.lane.b32.xlu1 %v1875_v43, %s2726_s26 }
 0x843   :  { %v1879_v54 = vpop.permute.xlu2 %1878 }
 0x844   :  { %v1884_v45 = vadd.f32 %v1879_v54, %v3298_v55 }
 0x846   :  { %v1886_v26 = vsel %vm1160_vm14, %v1884_v45, 0.0 }
 0x847   :  { %1887 = vadd.xlane.f32.xlu0 %v1886_v26 }
 0x85b   :  { %1934 = vrot.lane.b32.xlu0 %v1930_v12, %s2726_s26 }
 0x863   :  { %v1881_v38 = vpop.permute.xlu1 %1880 }
 0x864   :  { %v1885_v16 = vadd.f32 %v1881_v38, %v3304_v23 }
 0x866   :  { %v1889_v39 = vsel %vm1160_vm14, %v1885_v16, 0.0 }
 0x867   :  { %1890 = vadd.xlane.f32.xlu2 %v1889_v39 }
 0x8ba   :  { %v1888_v20 = vpop.xlane.xlu0 %1887 }
 0x8bb   :  { %v1892_v55 = vmul.f32 %v1888_v20, %v3206_v17 }
 0x8bd   :  { %v1894_v4 = vsub.f32 %v1884_v45, %v1892_v55 }
 0x8bf   :  { %v1896_v34 = vmul.f32 %v1894_v4, %v1894_v4 }
 0x8c1   :  { %v1898_v63 = vsel %vm1160_vm14, %v1896_v34, 0.0 }
 0x8c2   :  { %1899 = vadd.xlane.f32.xlu1 %v1898_v63 }
 0x8cd   :  { %v1935_v3 = vpop.permute.xlu0 %1934 }
 0x8da   :  { %v1891_v33 = vpop.xlane.xlu2 %1890 }
 0x8db   :  { %v1893_v18 = vmul.f32 %v1891_v33, %v3206_v17 }
 0x8dd   :  { %v1895_v28 = vsub.f32 %v1885_v16, %v1893_v18 }
 0x8df   :  { %v1897_v47 = vmul.f32 %v1895_v28, %v1895_v28 }
 0x8e1   :  { %v1901_v23 = vsel %vm1160_vm14, %v1897_v47, 0.0 }
 0x8e2   :  { %1902 = vadd.xlane.f32.xlu0 %v1901_v23 }
 0x8f6   :  { %1936 = vrot.lane.b32.xlu0 %v1931_v48, %s2726_s26 }
 0x935   :  { %v1900_v32 = vpop.xlane.xlu1 %1899 }
 0x936   :  { %v1904_v49 = vmul.f32 %v1900_v32, %v3206_v17 }
 0x938   :  { %v1906_v25 = vadd.f32 1e-06, %v1904_v49 }
 0x93a   :  { %2463 = vrsqrt.f32 %v1906_v25  ;;  %vm1914_vm0 = vweird.f32 %v1906_v25 }
 0x940   :  { %v2464_v52 = vpop.eup %2463 }
 0x941   :  { %v1909_v53 = vmul.f32 %v2464_v52, %v1906_v25  ;;  %vm1915_vm15 = vweird.f32 %v2464_v52 }
 0x942   :  { %vm1916_vm1 = vmor %vm1914_vm0, %vm1915_vm15 }
 0x943   :  { %v1910_v36 = vmul.f32 %v2464_v52, %v1909_v53 }
 0x945   :  { %v1911_v59 = vmul.f32 0.5, %v1910_v36 }
 0x947   :  { %v1912_v60 = vsub.f32 1.5, %v1911_v59 }
 0x949   :  { %v1913_v62 = vmul.f32 %v2464_v52, %v1912_v60 }
 0x94b   :  { %v1917_v44 = vsel %vm1916_vm1, %v2464_v52, %v1913_v62 }
 0x94c   :  { %v1928_v58 = vmul.f32 %v1917_v44, %v1894_v4 }
 0x94e   :  { %v1940_v7 = vmul.f32 %v1935_v3, %v1928_v58 }
 0x950   :  { %v1942_v19 = vadd.f32 %v1940_v7, %v3340_v10 }
 0x955   :  { %v1903_v41 = vpop.xlane.xlu0 %1902 }
 0x956   :  { %v1905_v46 = vmul.f32 %v1903_v41, %v3206_v17 }
 0x958   :  { %v1907_v8 = vadd.f32 1e-06, %v1905_v46 }
 0x95a   :  { %2465 = vrsqrt.f32 %v1907_v8  ;;  %vm1924_vm3 = vweird.f32 %v1907_v8 }
 0x960   :  { %v2466_v61 = vpop.eup %2465 }
 0x961   :  { %v1919_v30 = vmul.f32 %v2466_v61, %v1907_v8  ;;  %vm1925_vm2 = vweird.f32 %v2466_v61 }
 0x962   :  { %vm1926_vm4 = vmor %vm1924_vm3, %vm1925_vm2 }
 0x963   :  { %v1920_v31 = vmul.f32 %v2466_v61, %v1919_v30 }
 0x965   :  { %v1921_v1 = vmul.f32 0.5, %v1920_v31 }
 0x967   :  { %v1922_v50 = vsub.f32 1.5, %v1921_v1 }
 0x968   :  { %v1937_v9 = vpop.permute.xlu0 %1936 }
 0x969   :  { %v1923_v17 = vmul.f32 %v2466_v61, %v1922_v50 }
 0x96b   :  { %v1927_v2 = vsel %vm1926_vm4, %v2466_v61, %v1923_v17 }
 0x96c   :  { %v1929_v6 = vmul.f32 %v1927_v2, %v1895_v28 }
 0x96e   :  { %v1941_v14 = vmul.f32 %v1937_v9, %v1929_v6 }
 0x970   :  { %v1943_v22 = vadd.f32 %v1941_v14, %v1417_v11 }
 0x972   :  { %v1952_v57 = vpack.c.bf16 %v1943_v22, %v1942_v19 }
 0x974   :  { %2298 = vmatmul.msk.bf16.vlgmr.msrb.gmra.mxu3 %vm1160_vm14, %v1952_v57 }
 0x9f7   :  { %v1993_v24 = vpop.f32.mrf.mxu3 }
 0x9f8   :  { %v1994_v37 = vadd.f32 %v2420_v5, %v1993_v24 }
 0x9fa   :  { %1999 = vst.msk [vmem:[%s2896_s24] sm:$0xff] %vm1998_vm5, %v1994_v37 }
 0x9ff   :  { %v1995_v27 = vpop.f32.mrf.mxu3 }
 0xa00   :  { %v1996_v35 = vadd.f32 %v2420_v5, %v1995_v27 }
 0xa02   :  { %2000 = vst.msk [vmem:[%s2896_s24 + $0x8] sm:$0xff] %vm1998_vm5, %v1996_v35 }
 0xa03   :  { %2005 = vsyncpa [#allocation3], 1 }
 0xa04   :  { %2006 = vsyncpa [#allocation5], 1 }
 0xa05   :  { %2007 = vsyncpa [#allocation8], 1 }
 0xa06   :  { %2008 = vsyncpa [#allocation11], 1 }
 0xa07   :  { %2009 = vsyncpa [#allocation14], 1 }

</bundles_post_ra>
